<compile_context>
chip_gen: v7x
topology: tpu7x:2x2x1
jax: 0.10.0
libtpu: 0.0.40
codegen_flags: <defaults>
</compile_context>

<pallas_src>
import jax
import jax.numpy as jnp
from jax.experimental import pallas as pl
from jax.experimental.pallas import tpu as pltpu


NEG_SLOPE = 0.01  # F.leaky_relu default negative_slope


def _leaky_relu(h):
    return jnp.where(h > 0, h, NEG_SLOPE * h)


def _round_up(x, m):
    return (x + m - 1) // m * m


def _cdiv(a, b):
    return (a + b - 1) // b


def _device_kind():
    try:
        return jax.devices()[0].device_kind.lower()
    except Exception:
        return ""


def _is_v5e(kind):
    return ("v5 lite" in kind) or ("v5e" in kind) or ("v5litepod" in kind)


def _is_v7(kind):
    return "v7" in kind


def _vmem_capacity_bytes(kind):
    """Physical VMEM per TensorCore; query the runtime, fall back on device kind."""
    try:
        cap = int(pltpu.get_tpu_info().vmem_capacity_bytes)
        if cap > 0:
            return cap
    except Exception:
        pass
    if _is_v7(kind):
        return 64 * 1024 * 1024
    return 128 * 1024 * 1024


# ----------------------------------------------------------------------------- kernel
def posenet_kernel(x_ref, w1_ref, w2_ref, w3_ref, w4_ref,
                   b1_ref, b2_ref, b3_ref, b4_ref, out_ref):
    x = x_ref[...]                          # (tm, n_in_pad) bf16 (cast in wrapper)

    def dot_bf16(a_f32, w_ref):
        # bf16 x bf16 on the MXU, f32 accumulation.
        return jnp.dot(a_f32.astype(jnp.bfloat16), w_ref[...],
                       preferred_element_type=jnp.float32)

    h1 = _leaky_relu(jnp.dot(x, w1_ref[...],
                             preferred_element_type=jnp.float32) + b1_ref[...])
    h2 = _leaky_relu(dot_bf16(h1, w2_ref) + b2_ref[...])
    # residual connection: l3(h2) + h1
    h3 = _leaky_relu(dot_bf16(h2, w3_ref) + b3_ref[...] + h1)
    out = dot_bf16(h3, w4_ref) + b4_ref[...]

    out_ref[...] = out.astype(out_ref.dtype)


# ----------------------------------------------------------------------------- wrapper
def posenet_forward(x, params, *, tm=None):
    """x: [B, n_in] float32; params: dict with f32 w1..w4 ([in,out]) and b1..b4 ([1,out])."""
    B, n_in = x.shape
    n_hidden = params["w1"].shape[1]
    n_out = params["w4"].shape[1]

    kind = _device_kind()
    if tm is None:
        # v5e: slower MXU, overhead already amortized at 256; v6e/v7x: bigger tiles
        # reduce the ~0.35us/step pipeline tax.
        tm = 256 if _is_v5e(kind) else 512

    n_in_pad = _round_up(max(n_in, 128), 128)    # lane-dense layer-1 input
    n_out_pad = _round_up(max(n_out, 128), 128)  # lane-dense output stores

    # bf16 weights (halves the dominant HBM traffic); f32 biases.
    w1 = jnp.pad(params["w1"], ((0, n_in_pad - n_in), (0, 0))).astype(jnp.bfloat16)
    w2 = params["w2"].astype(jnp.bfloat16)
    w3 = params["w3"].astype(jnp.bfloat16)
    w4 = jnp.pad(params["w4"], ((0, 0), (0, n_out_pad - n_out))).astype(jnp.bfloat16)
    b1 = params["b1"].astype(jnp.float32)
    b2 = params["b2"].astype(jnp.float32)
    b3 = params["b3"].astype(jnp.float32)
    b4 = jnp.pad(params["b4"], ((0, 0), (0, n_out_pad - n_out))).astype(jnp.float32)

    # Batch tiling: pick a step count first, then size the tile so that padded
    # (dead) rows are < one tile.  On v7x prefer an even step count so the
    # megacore split ("parallel" batch axis) is balanced across both TCs.
    tm = max(8, min(int(tm), _round_up(B, 8)))
    n_steps = _cdiv(B, tm)
    if _is_v7(kind) and n_steps > 1 and (n_steps % 2 == 1):
        n_steps += 1
    tm = _round_up(_cdiv(B, n_steps), 8)
    B_pad = n_steps * tm

    # x: bf16 + zero-padded rows/lanes (kernel would cast to bf16 anyway).
    x_pad = jnp.pad(x.astype(jnp.bfloat16),
                    ((0, B_pad - B), (0, n_in_pad - n_in)))

    # VMEM budget: single-buffered bf16 weights + f32 biases, double-buffered
    # x/out tiles, f32 activation scratch; 2x slack, generation-aware clamp.
    weight_bytes = (w1.size + w2.size + w3.size + w4.size) * 2
    bias_bytes = (b1.size + b2.size + b3.size + b4.size) * 4
    io_bytes = 2 * (tm * n_in_pad * 2 + tm * n_out_pad * 4)
    act_bytes = 4 * tm * n_hidden * 4
    est = weight_bytes + bias_bytes + io_bytes + act_bytes
    vmem_cap = _vmem_capacity_bytes(kind)
    vmem_limit = int(min(max(2 * est, 16 * 1024 * 1024), int(0.72 * vmem_cap)))

    flops = 2 * B_pad * (n_in_pad * n_hidden + 2 * n_hidden * n_hidden
                         + n_hidden * n_out_pad)
    bytes_accessed = weight_bytes + bias_bytes + B_pad * (n_in_pad * 2 + n_out_pad * 4)
    cost = pl.CostEstimate(flops=int(flops), transcendentals=0,
                           bytes_accessed=int(bytes_accessed))

    def build(single_buffer_consts):
        if single_buffer_consts:
            # Constant block index => resident across grid steps; Buffered(1)
            # drops the redundant second buffer (halves resident weight VMEM).
            def const_spec(shape):
                return pl.BlockSpec(shape, lambda i: (0,) * len(shape),
                                    pipeline_mode=pl.Buffered(1))
        else:
            def const_spec(shape):
                return pl.BlockSpec(shape, lambda i: (0,) * len(shape))

        in_specs = [
            pl.BlockSpec((tm, n_in_pad), lambda i: (i, 0)),   # x: pipelined over batch
            const_spec(w1.shape), const_spec(w2.shape),
            const_spec(w3.shape), const_spec(w4.shape),       # weights: resident
            const_spec(b1.shape), const_spec(b2.shape),
            const_spec(b3.shape), const_spec(b4.shape),       # biases: resident
        ]
        out_specs = pl.BlockSpec((tm, n_out_pad), lambda i: (i, 0))

        return pl.pallas_call(
            posenet_kernel,
            out_shape=jax.ShapeDtypeStruct((B_pad, n_out_pad), jnp.float32),
            grid=(n_steps,),
            in_specs=in_specs,
            out_specs=out_specs,
            compiler_params=pltpu.CompilerParams(
                dimension_semantics=("parallel",),            # v7x: both TCs split batch
                vmem_limit_bytes=vmem_limit),
            cost_estimate=cost,
        )

    args = (x_pad, w1, w2, w3, w4, b1, b2, b3, b4)
    try:
        out_pad = build(True)(*args)
    except Exception:
        # Fallback: some JAX builds may reject pl.Buffered(1) on pallas_call
        # inputs; default double-buffering is correct, just uses more VMEM.
        out_pad = build(False)(*args)

    return out_pad[:B, :n_out]


# ----------------------------------------------------------------------------- params / refs
def init_posenet_params(key, n_in=34, n_hidden=1024, mode="generator"):
    """Deterministic init mirroring PyTorch nn.Linear default (uniform +/- 1/sqrt(fan_in)).
    Weights stored as [in, out] (transposed vs. nn.Linear.weight), f32 master copy."""
    assert n_in % 2 == 0
    n_out = n_in // 2 if mode == "generator" else 1
    dims = [(n_in, n_hidden), (n_hidden, n_hidden), (n_hidden, n_hidden), (n_hidden, n_out)]
    params = {}
    keys = jax.random.split(key, 2 * len(dims))
    for i, (fan_in, fan_out) in enumerate(dims):
        bound = 1.0 / jnp.sqrt(jnp.float32(fan_in))
        params[f"w{i+1}"] = jax.random.uniform(
            keys[2 * i], (fan_in, fan_out), jnp.float32, -bound, bound)
        params[f"b{i+1}"] = jax.random.uniform(
            keys[2 * i + 1], (1, fan_out), jnp.float32, -bound, bound)
    return params


def posenet_reference_matched(x, params):
    """Pure-JAX reference using the same bf16-weight / f32-accumulate math as the kernel."""
    bf16 = jnp.bfloat16
    w1 = params["w1"].astype(bf16)
    w2 = params["w2"].astype(bf16)
    w3 = params["w3"].astype(bf16)
    w4 = params["w4"].astype(bf16)

    def dot(a, w):
        return jnp.dot(a.astype(bf16), w, preferred_element_type=jnp.float32)

    h1 = _leaky_relu(dot(x, w1) + params["b1"])
    h2 = _leaky_relu(dot(h1, w2) + params["b2"])
    h3 = _leaky_relu(dot(h2, w3) + params["b3"] + h1)
    return dot(h3, w4) + params["b4"]


def posenet_reference_f32(x, params):
    """Full-f32 reference of the PyTorch forward pass (for validation of the f32 path)."""
    h1 = _leaky_relu(x @ params["w1"] + params["b1"])
    h2 = _leaky_relu(h1 @ params["w2"] + params["b2"])
    h3 = _leaky_relu(h2 @ params["w3"] + params["b3"] + h1)
    return h3 @ params["w4"] + params["b4"]


if __name__ == "__main__":
    key = jax.random.PRNGKey(0)
    k_x1, k_x2, k_p = jax.random.split(key, 3)

    # Module-consistent small shapes: n_in=34 (pose keypoints), reduced hidden.
    n_in, n_hidden = 34, 256
    params = init_posenet_params(k_p, n_in=n_in, n_hidden=n_hidden, mode="generator")

    # Test 1: tiny batch (single grid step).
    B1 = 8
    x1 = jax.random.normal(k_x1, (B1, n_in), jnp.float32)
    out1 = jax.block_until_ready(posenet_forward(x1, params))
    ref1 = posenet_reference_matched(x1, params)
    assert out1.shape == (B1, n_in // 2)
    assert jnp.allclose(out1, ref1, atol=1e-3, rtol=1e-3), "mismatch vs bf16-matched reference (B=8)"

    # Test 2: larger batch exercising the batch grid, low-waste padding
    # (B not a multiple of the row tile) and megacore semantics.
    B2 = 300
    x2 = jax.random.normal(k_x2, (B2, n_in), jnp.float32)
    out2 = jax.block_until_ready(posenet_forward(x2, params, tm=128))
    ref2 = posenet_reference_matched(x2, params)
    assert out2.shape == (B2, n_in // 2)
    assert jnp.allclose(out2, ref2, atol=1e-3, rtol=1e-3), "mismatch vs bf16-matched reference (B=300)"

    # NOTE: vs the full-f32 PyTorch-equivalent reference, bf16 weight storage introduces
    # ~1e-2 relative error (expected quantization effect, not a kernel bug).
    _ = posenet_reference_f32(x2, params)

    print("KERNEL_OK")
</pallas_src>

<mosaic_0001>
module attributes {stable_mosaic.version = 11 : i64} {
  func.func @posenet_kernel(%arg0: i32, %arg1: memref<8x128xbf16, #tpu.memory_space<vmem>>, %arg2: memref<128x256xbf16, #tpu.memory_space<vmem>>, %arg3: memref<256x256xbf16, #tpu.memory_space<vmem>>, %arg4: memref<256x256xbf16, #tpu.memory_space<vmem>>, %arg5: memref<256x128xbf16, #tpu.memory_space<vmem>>, %arg6: memref<1x256xf32, #tpu.memory_space<vmem>>, %arg7: memref<1x256xf32, #tpu.memory_space<vmem>>, %arg8: memref<1x256xf32, #tpu.memory_space<vmem>>, %arg9: memref<1x128xf32, #tpu.memory_space<vmem>>, %arg10: memref<8x128xf32, #tpu.memory_space<vmem>>) attributes {dimension_semantics = [#tpu.dimension_semantics<parallel>], iteration_bounds = array<i64: 1>, scalar_prefetch = 0 : i64, scratch_operands = 0 : i64, tpu.core_type = #tpu.core_type<tc>, window_params = [{transform_indices = @transform_0, window_bounds = array<i64: 8, 128>}, {pipeline_mode = #tpu.pipeline_mode<synchronous>, transform_indices = @transform_1, window_bounds = array<i64: 128, 256>}, {pipeline_mode = #tpu.pipeline_mode<synchronous>, transform_indices = @transform_2, window_bounds = array<i64: 256, 256>}, {pipeline_mode = #tpu.pipeline_mode<synchronous>, transform_indices = @transform_3, window_bounds = array<i64: 256, 256>}, {pipeline_mode = #tpu.pipeline_mode<synchronous>, transform_indices = @transform_4, window_bounds = array<i64: 256, 128>}, {pipeline_mode = #tpu.pipeline_mode<synchronous>, transform_indices = @transform_5, window_bounds = array<i64: 1, 256>}, {pipeline_mode = #tpu.pipeline_mode<synchronous>, transform_indices = @transform_6, window_bounds = array<i64: 1, 256>}, {pipeline_mode = #tpu.pipeline_mode<synchronous>, transform_indices = @transform_7, window_bounds = array<i64: 1, 256>}, {pipeline_mode = #tpu.pipeline_mode<synchronous>, transform_indices = @transform_8, window_bounds = array<i64: 1, 128>}, {transform_indices = @transform_9, window_bounds = array<i64: 8, 128>}]} {
    %c0 = arith.constant 0 : index
    %c0_0 = arith.constant 0 : index
    %0 = vector.load %arg1[%c0, %c0_0] : memref<8x128xbf16, #tpu.memory_space<vmem>>, vector<8x128xbf16>
    %c0_1 = arith.constant 0 : index
    %c0_2 = arith.constant 0 : index
    %1 = vector.load %arg2[%c0_1, %c0_2] : memref<128x256xbf16, #tpu.memory_space<vmem>>, vector<128x256xbf16>
    %cst = arith.constant dense<0.000000e+00> : vector<8x256xf32>
    %2 = tpu.matmul %0, %1, %cst {dimension_numbers = #tpu.dot_dimension_numbers<[1], [0], [0], [1], [0, 0, 1, 1], [], []>} : vector<8x128xbf16>, vector<128x256xbf16>, vector<8x256xf32> -> vector<8x256xf32>
    %c0_3 = arith.constant 0 : index
    %c0_4 = arith.constant 0 : index
    %3 = vector.load %arg6[%c0_3, %c0_4] : memref<1x256xf32, #tpu.memory_space<vmem>>, vector<1x256xf32>
    %4 = vector.broadcast %3 : vector<1x256xf32> to vector<8x256xf32>
    %5 = arith.addf %2, %4 : vector<8x256xf32>
    %cst_5 = arith.constant 0.000000e+00 : f32
    %6 = vector.broadcast %cst_5 : f32 to vector<8x256xf32>
    %7 = arith.cmpf ogt, %5, %6 : vector<8x256xf32>
    %cst_6 = arith.constant 0.00999999977 : f32
    %8 = vector.broadcast %cst_6 : f32 to vector<8x256xf32>
    %9 = arith.mulf %8, %5 : vector<8x256xf32>
    %10 = arith.select %7, %5, %9 : vector<8x256xi1>, vector<8x256xf32>
    %11 = arith.truncf %10 : vector<8x256xf32> to vector<8x256xbf16>
    %c0_7 = arith.constant 0 : index
    %c0_8 = arith.constant 0 : index
    %12 = vector.load %arg3[%c0_7, %c0_8] : memref<256x256xbf16, #tpu.memory_space<vmem>>, vector<256x256xbf16>
    %cst_9 = arith.constant dense<0.000000e+00> : vector<8x256xf32>
    %13 = tpu.matmul %11, %12, %cst_9 {dimension_numbers = #tpu.dot_dimension_numbers<[1], [0], [0], [1], [0, 0, 1, 1], [], []>} : vector<8x256xbf16>, vector<256x256xbf16>, vector<8x256xf32> -> vector<8x256xf32>
    %c0_10 = arith.constant 0 : index
    %c0_11 = arith.constant 0 : index
    %14 = vector.load %arg7[%c0_10, %c0_11] : memref<1x256xf32, #tpu.memory_space<vmem>>, vector<1x256xf32>
    %15 = vector.broadcast %14 : vector<1x256xf32> to vector<8x256xf32>
    %16 = arith.addf %13, %15 : vector<8x256xf32>
    %cst_12 = arith.constant 0.000000e+00 : f32
    %17 = vector.broadcast %cst_12 : f32 to vector<8x256xf32>
    %18 = arith.cmpf ogt, %16, %17 : vector<8x256xf32>
    %cst_13 = arith.constant 0.00999999977 : f32
    %19 = vector.broadcast %cst_13 : f32 to vector<8x256xf32>
    %20 = arith.mulf %19, %16 : vector<8x256xf32>
    %21 = arith.select %18, %16, %20 : vector<8x256xi1>, vector<8x256xf32>
    %22 = arith.truncf %21 : vector<8x256xf32> to vector<8x256xbf16>
    %c0_14 = arith.constant 0 : index
    %c0_15 = arith.constant 0 : index
    %23 = vector.load %arg4[%c0_14, %c0_15] : memref<256x256xbf16, #tpu.memory_space<vmem>>, vector<256x256xbf16>
    %cst_16 = arith.constant dense<0.000000e+00> : vector<8x256xf32>
    %24 = tpu.matmul %22, %23, %cst_16 {dimension_numbers = #tpu.dot_dimension_numbers<[1], [0], [0], [1], [0, 0, 1, 1], [], []>} : vector<8x256xbf16>, vector<256x256xbf16>, vector<8x256xf32> -> vector<8x256xf32>
    %c0_17 = arith.constant 0 : index
    %c0_18 = arith.constant 0 : index
    %25 = vector.load %arg8[%c0_17, %c0_18] : memref<1x256xf32, #tpu.memory_space<vmem>>, vector<1x256xf32>
    %26 = vector.broadcast %25 : vector<1x256xf32> to vector<8x256xf32>
    %27 = arith.addf %24, %26 : vector<8x256xf32>
    %28 = arith.addf %27, %10 : vector<8x256xf32>
    %cst_19 = arith.constant 0.000000e+00 : f32
    %29 = vector.broadcast %cst_19 : f32 to vector<8x256xf32>
    %30 = arith.cmpf ogt, %28, %29 : vector<8x256xf32>
    %cst_20 = arith.constant 0.00999999977 : f32
    %31 = vector.broadcast %cst_20 : f32 to vector<8x256xf32>
    %32 = arith.mulf %31, %28 : vector<8x256xf32>
    %33 = arith.select %30, %28, %32 : vector<8x256xi1>, vector<8x256xf32>
    %34 = arith.truncf %33 : vector<8x256xf32> to vector<8x256xbf16>
    %c0_21 = arith.constant 0 : index
    %c0_22 = arith.constant 0 : index
    %35 = vector.load %arg5[%c0_21, %c0_22] : memref<256x128xbf16, #tpu.memory_space<vmem>>, vector<256x128xbf16>
    %cst_23 = arith.constant dense<0.000000e+00> : vector<8x128xf32>
    %36 = tpu.matmul %34, %35, %cst_23 {dimension_numbers = #tpu.dot_dimension_numbers<[1], [0], [0], [1], [0, 0, 1, 1], [], []>} : vector<8x256xbf16>, vector<256x128xbf16>, vector<8x128xf32> -> vector<8x128xf32>
    %c0_24 = arith.constant 0 : index
    %c0_25 = arith.constant 0 : index
    %37 = vector.load %arg9[%c0_24, %c0_25] : memref<1x128xf32, #tpu.memory_space<vmem>>, vector<1x128xf32>
    %38 = vector.broadcast %37 : vector<1x128xf32> to vector<8x128xf32>
    %39 = arith.addf %36, %38 : vector<8x128xf32>
    %c0_26 = arith.constant 0 : index
    %c0_27 = arith.constant 0 : index
    %40 = vector.load %arg10[%c0_26, %c0_27] : memref<8x128xf32, #tpu.memory_space<vmem>>, vector<8x128xf32>
    tpu.vector_store %arg10[%c0_26, %c0_27], %39 {strides = array<i32>} : memref<8x128xf32, #tpu.memory_space<vmem>>, vector<8x128xf32>,
    return
  }
  func.func @transform_0(%arg0: i32) -> (i32, i32) {
    %c0_i32 = arith.constant 0 : i32
    %c0_i32_0 = arith.constant 0 : i32
    return %arg0, %c0_i32 : i32, i32
  }
  func.func @transform_1(%arg0: i32) -> (i32, i32) {
    %c0_i32 = arith.constant 0 : i32
    %c0_i32_0 = arith.constant 0 : i32
    %c0_i32_1 = arith.constant 0 : i32
    return %c0_i32, %c0_i32_0 : i32, i32
  }
  func.func @transform_2(%arg0: i32) -> (i32, i32) {
    %c0_i32 = arith.constant 0 : i32
    %c0_i32_0 = arith.constant 0 : i32
    %c0_i32_1 = arith.constant 0 : i32
    return %c0_i32, %c0_i32_0 : i32, i32
  }
  func.func @transform_3(%arg0: i32) -> (i32, i32) {
    %c0_i32 = arith.constant 0 : i32
    %c0_i32_0 = arith.constant 0 : i32
    %c0_i32_1 = arith.constant 0 : i32
    return %c0_i32, %c0_i32_0 : i32, i32
  }
  func.func @transform_4(%arg0: i32) -> (i32, i32) {
    %c0_i32 = arith.constant 0 : i32
    %c0_i32_0 = arith.constant 0 : i32
    %c0_i32_1 = arith.constant 0 : i32
    return %c0_i32, %c0_i32_0 : i32, i32
  }
  func.func @transform_5(%arg0: i32) -> (i32, i32) {
    %c0_i32 = arith.constant 0 : i32
    %c0_i32_0 = arith.constant 0 : i32
    %c0_i32_1 = arith.constant 0 : i32
    return %c0_i32, %c0_i32_0 : i32, i32
  }
  func.func @transform_6(%arg0: i32) -> (i32, i32) {
    %c0_i32 = arith.constant 0 : i32
    %c0_i32_0 = arith.constant 0 : i32
    %c0_i32_1 = arith.constant 0 : i32
    return %c0_i32, %c0_i32_0 : i32, i32
  }
  func.func @transform_7(%arg0: i32) -> (i32, i32) {
    %c0_i32 = arith.constant 0 : i32
    %c0_i32_0 = arith.constant 0 : i32
    %c0_i32_1 = arith.constant 0 : i32
    return %c0_i32, %c0_i32_0 : i32, i32
  }
  func.func @transform_8(%arg0: i32) -> (i32, i32) {
    %c0_i32 = arith.constant 0 : i32
    %c0_i32_0 = arith.constant 0 : i32
    %c0_i32_1 = arith.constant 0 : i32
    return %c0_i32, %c0_i32_0 : i32, i32
  }
  func.func @transform_9(%arg0: i32) -> (i32, i32) {
    %c0_i32 = arith.constant 0 : i32
    %c0_i32_0 = arith.constant 0 : i32
    return %arg0, %c0_i32 : i32, i32
  }
}

module attributes {stable_mosaic.version = 11 : i64} {
  func.func @posenet_kernel(%arg0: i32, %arg1: memref<8x128xbf16, #tpu.memory_space<vmem>>, %arg2: memref<128x256xbf16, #tpu.memory_space<vmem>>, %arg3: memref<256x256xbf16, #tpu.memory_space<vmem>>, %arg4: memref<256x256xbf16, #tpu.memory_space<vmem>>, %arg5: memref<256x128xbf16, #tpu.memory_space<vmem>>, %arg6: memref<1x256xf32, #tpu.memory_space<vmem>>, %arg7: memref<1x256xf32, #tpu.memory_space<vmem>>, %arg8: memref<1x256xf32, #tpu.memory_space<vmem>>, %arg9: memref<1x128xf32, #tpu.memory_space<vmem>>, %arg10: memref<8x128xf32, #tpu.memory_space<vmem>>) attributes {dimension_semantics = [#tpu.dimension_semantics<parallel>], iteration_bounds = array<i64: 1>, scalar_prefetch = 0 : i64, scratch_operands = 0 : i64, tpu.core_type = #tpu.core_type<tc>, window_params = [{transform_indices = @transform_0, window_bounds = array<i64: 8, 128>}, {pipeline_mode = #tpu.pipeline_mode<synchronous>, transform_indices = @transform_1, window_bounds = array<i64: 128, 256>}, {pipeline_mode = #tpu.pipeline_mode<synchronous>, transform_indices = @transform_2, window_bounds = array<i64: 256, 256>}, {pipeline_mode = #tpu.pipeline_mode<synchronous>, transform_indices = @transform_3, window_bounds = array<i64: 256, 256>}, {pipeline_mode = #tpu.pipeline_mode<synchronous>, transform_indices = @transform_4, window_bounds = array<i64: 256, 128>}, {pipeline_mode = #tpu.pipeline_mode<synchronous>, transform_indices = @transform_5, window_bounds = array<i64: 1, 256>}, {pipeline_mode = #tpu.pipeline_mode<synchronous>, transform_indices = @transform_6, window_bounds = array<i64: 1, 256>}, {pipeline_mode = #tpu.pipeline_mode<synchronous>, transform_indices = @transform_7, window_bounds = array<i64: 1, 256>}, {pipeline_mode = #tpu.pipeline_mode<synchronous>, transform_indices = @transform_8, window_bounds = array<i64: 1, 128>}, {transform_indices = @transform_9, window_bounds = array<i64: 8, 128>}]} {
    %c0 = arith.constant 0 : index
    %c0_0 = arith.constant 0 : index
    %0 = vector.load %arg1[%c0, %c0_0] : memref<8x128xbf16, #tpu.memory_space<vmem>>, vector<8x128xbf16>
    %c0_1 = arith.constant 0 : index
    %c0_2 = arith.constant 0 : index
    %1 = vector.load %arg2[%c0_1, %c0_2] : memref<128x256xbf16, #tpu.memory_space<vmem>>, vector<128x256xbf16>
    %cst = arith.constant dense<0.000000e+00> : vector<8x256xf32>
    %2 = tpu.matmul %0, %1, %cst {dimension_numbers = #tpu.dot_dimension_numbers<[1], [0], [0], [1], [0, 0, 1, 1], [], []>} : vector<8x128xbf16>, vector<128x256xbf16>, vector<8x256xf32> -> vector<8x256xf32>
    %c0_3 = arith.constant 0 : index
    %c0_4 = arith.constant 0 : index
    %3 = vector.load %arg6[%c0_3, %c0_4] : memref<1x256xf32, #tpu.memory_space<vmem>>, vector<1x256xf32>
    %4 = vector.broadcast %3 : vector<1x256xf32> to vector<8x256xf32>
    %5 = arith.addf %2, %4 : vector<8x256xf32>
    %cst_5 = arith.constant 0.000000e+00 : f32
    %6 = vector.broadcast %cst_5 : f32 to vector<8x256xf32>
    %7 = arith.cmpf ogt, %5, %6 : vector<8x256xf32>
    %cst_6 = arith.constant 0.00999999977 : f32
    %8 = vector.broadcast %cst_6 : f32 to vector<8x256xf32>
    %9 = arith.mulf %8, %5 : vector<8x256xf32>
    %10 = arith.select %7, %5, %9 : vector<8x256xi1>, vector<8x256xf32>
    %11 = arith.truncf %10 : vector<8x256xf32> to vector<8x256xbf16>
    %c0_7 = arith.constant 0 : index
    %c0_8 = arith.constant 0 : index
    %12 = vector.load %arg3[%c0_7, %c0_8] : memref<256x256xbf16, #tpu.memory_space<vmem>>, vector<256x256xbf16>
    %cst_9 = arith.constant dense<0.000000e+00> : vector<8x256xf32>
    %13 = tpu.matmul %11, %12, %cst_9 {dimension_numbers = #tpu.dot_dimension_numbers<[1], [0], [0], [1], [0, 0, 1, 1], [], []>} : vector<8x256xbf16>, vector<256x256xbf16>, vector<8x256xf32> -> vector<8x256xf32>
    %c0_10 = arith.constant 0 : index
    %c0_11 = arith.constant 0 : index
    %14 = vector.load %arg7[%c0_10, %c0_11] : memref<1x256xf32, #tpu.memory_space<vmem>>, vector<1x256xf32>
    %15 = vector.broadcast %14 : vector<1x256xf32> to vector<8x256xf32>
    %16 = arith.addf %13, %15 : vector<8x256xf32>
    %cst_12 = arith.constant 0.000000e+00 : f32
    %17 = vector.broadcast %cst_12 : f32 to vector<8x256xf32>
    %18 = arith.cmpf ogt, %16, %17 : vector<8x256xf32>
    %cst_13 = arith.constant 0.00999999977 : f32
    %19 = vector.broadcast %cst_13 : f32 to vector<8x256xf32>
    %20 = arith.mulf %19, %16 : vector<8x256xf32>
    %21 = arith.select %18, %16, %20 : vector<8x256xi1>, vector<8x256xf32>
    %22 = arith.truncf %21 : vector<8x256xf32> to vector<8x256xbf16>
    %c0_14 = arith.constant 0 : index
    %c0_15 = arith.constant 0 : index
    %23 = vector.load %arg4[%c0_14, %c0_15] : memref<256x256xbf16, #tpu.memory_space<vmem>>, vector<256x256xbf16>
    %cst_16 = arith.constant dense<0.000000e+00> : vector<8x256xf32>
    %24 = tpu.matmul %22, %23, %cst_16 {dimension_numbers = #tpu.dot_dimension_numbers<[1], [0], [0], [1], [0, 0, 1, 1], [], []>} : vector<8x256xbf16>, vector<256x256xbf16>, vector<8x256xf32> -> vector<8x256xf32>
    %c0_17 = arith.constant 0 : index
    %c0_18 = arith.constant 0 : index
    %25 = vector.load %arg8[%c0_17, %c0_18] : memref<1x256xf32, #tpu.memory_space<vmem>>, vector<1x256xf32>
    %26 = vector.broadcast %25 : vector<1x256xf32> to vector<8x256xf32>
    %27 = arith.addf %24, %26 : vector<8x256xf32>
    %28 = arith.addf %27, %10 : vector<8x256xf32>
    %cst_19 = arith.constant 0.000000e+00 : f32
    %29 = vector.broadcast %cst_19 : f32 to vector<8x256xf32>
    %30 = arith.cmpf ogt, %28, %29 : vector<8x256xf32>
    %cst_20 = arith.constant 0.00999999977 : f32
    %31 = vector.broadcast %cst_20 : f32 to vector<8x256xf32>
    %32 = arith.mulf %31, %28 : vector<8x256xf32>
    %33 = arith.select %30, %28, %32 : vector<8x256xi1>, vector<8x256xf32>
    %34 = arith.truncf %33 : vector<8x256xf32> to vector<8x256xbf16>
    %c0_21 = arith.constant 0 : index
    %c0_22 = arith.constant 0 : index
    %35 = vector.load %arg5[%c0_21, %c0_22] : memref<256x128xbf16, #tpu.memory_space<vmem>>, vector<256x128xbf16>
    %cst_23 = arith.constant dense<0.000000e+00> : vector<8x128xf32>
    %36 = tpu.matmul %34, %35, %cst_23 {dimension_numbers = #tpu.dot_dimension_numbers<[1], [0], [0], [1], [0, 0, 1, 1], [], []>} : vector<8x256xbf16>, vector<256x128xbf16>, vector<8x128xf32> -> vector<8x128xf32>
    %c0_24 = arith.constant 0 : index
    %c0_25 = arith.constant 0 : index
    %37 = vector.load %arg9[%c0_24, %c0_25] : memref<1x128xf32, #tpu.memory_space<vmem>>, vector<1x128xf32>
    %38 = vector.broadcast %37 : vector<1x128xf32> to vector<8x128xf32>
    %39 = arith.addf %36, %38 : vector<8x128xf32>
    %c0_26 = arith.constant 0 : index
    %c0_27 = arith.constant 0 : index
    %40 = vector.load %arg10[%c0_26, %c0_27] : memref<8x128xf32, #tpu.memory_space<vmem>>, vector<8x128xf32>
    tpu.vector_store %arg10[%c0_26, %c0_27], %39 {strides = array<i32>} : memref<8x128xf32, #tpu.memory_space<vmem>>, vector<8x128xf32>,
    return
  }
  func.func @transform_0(%arg0: i32) -> (i32, i32) {
    %c0_i32 = arith.constant 0 : i32
    %c0_i32_0 = arith.constant 0 : i32
    return %arg0, %c0_i32 : i32, i32
  }
  func.func @transform_1(%arg0: i32) -> (i32, i32) {
    %c0_i32 = arith.constant 0 : i32
    %c0_i32_0 = arith.constant 0 : i32
    %c0_i32_1 = arith.constant 0 : i32
    return %c0_i32, %c0_i32_0 : i32, i32
  }
  func.func @transform_2(%arg0: i32) -> (i32, i32) {
    %c0_i32 = arith.constant 0 : i32
    %c0_i32_0 = arith.constant 0 : i32
    %c0_i32_1 = arith.constant 0 : i32
    return %c0_i32, %c0_i32_0 : i32, i32
  }
  func.func @transform_3(%arg0: i32) -> (i32, i32) {
    %c0_i32 = arith.constant 0 : i32
    %c0_i32_0 = arith.constant 0 : i32
    %c0_i32_1 = arith.constant 0 : i32
    return %c0_i32, %c0_i32_0 : i32, i32
  }
  func.func @transform_4(%arg0: i32) -> (i32, i32) {
    %c0_i32 = arith.constant 0 : i32
    %c0_i32_0 = arith.constant 0 : i32
    %c0_i32_1 = arith.constant 0 : i32
    return %c0_i32, %c0_i32_0 : i32, i32
  }
  func.func @transform_5(%arg0: i32) -> (i32, i32) {
    %c0_i32 = arith.constant 0 : i32
    %c0_i32_0 = arith.constant 0 : i32
    %c0_i32_1 = arith.constant 0 : i32
    return %c0_i32, %c0_i32_0 : i32, i32
  }
  func.func @transform_6(%arg0: i32) -> (i32, i32) {
    %c0_i32 = arith.constant 0 : i32
    %c0_i32_0 = arith.constant 0 : i32
    %c0_i32_1 = arith.constant 0 : i32
    return %c0_i32, %c0_i32_0 : i32, i32
  }
  func.func @transform_7(%arg0: i32) -> (i32, i32) {
    %c0_i32 = arith.constant 0 : i32
    %c0_i32_0 = arith.constant 0 : i32
    %c0_i32_1 = arith.constant 0 : i32
    return %c0_i32, %c0_i32_0 : i32, i32
  }
  func.func @transform_8(%arg0: i32) -> (i32, i32) {
    %c0_i32 = arith.constant 0 : i32
    %c0_i32_0 = arith.constant 0 : i32
    %c0_i32_1 = arith.constant 0 : i32
    return %c0_i32, %c0_i32_0 : i32, i32
  }
  func.func @transform_9(%arg0: i32) -> (i32, i32) {
    %c0_i32 = arith.constant 0 : i32
    %c0_i32_0 = arith.constant 0 : i32
    return %arg0, %c0_i32 : i32, i32
  }
}

</mosaic_0001>

<bundles_post_ra>
// kernel: tpu_custom_call.1
= control target key start
LH: loop header
LB: loop body
LE: loop exit
PB: predicated region body
PF: predicated region fallthrough
CT: control target
= control target key end

     0   :  { %14 = vsyncpa [#allocation3], 0  ;;  %s1539_s0 = inlined_call_operand.hbm [shape: bf16[8,128], index: 0, kind: input, shape index: {}]   ;;  %s1540_s1 = inlined_call_operand.hbm [shape: bf16[128,256], index: 1, kind: input, shape index: {}]   ;;  %s1541_s2 = inlined_call_operand.hbm [shape: bf16[256,256], index: 2, kind: input, shape index: {}]   ;;  %s1542_s3 = inlined_call_operand.hbm [shape: bf16[256,256], index: 3, kind: input, shape index: {}]   ;;  %s1543_s4 = inlined_call_operand.hbm [shape: bf16[256,128], index: 4, kind: input, shape index: {}]   ;;  %s1544_s5 = inlined_call_operand.vmem [shape: f32[1,256], index: 5, kind: input, shape index: {}]   ;;  %s1545_s6 = inlined_call_operand.vmem [shape: f32[1,256], index: 6, kind: input, shape index: {}]   ;;  %s1546_s7 = inlined_call_operand.vmem [shape: f32[1,256], index: 7, kind: input, shape index: {}]   ;;  %s1547_s8 = inlined_call_operand.vmem [shape: f32[1,128], index: 8, kind: input, shape index: {}]   ;;  %s1548_s9 = inlined_call_operand.hbm [shape: f32[8,128], index: 9, kind: output, shape index: {}]  }
   0x1   :  { %15 = vsyncpa [#allocation6], 0 }
   0x2   :  { %16 = vsyncpa [#allocation9], 0 }
   0x3   :  { %17 = vsyncpa [#allocation4], 0  ;;  %s1365_s30 = smov [#allocation5]   ;;  %s1225_s13 = scalar_lea.hbm %s1540_s1, 2048 }
   0x4   :  { %s33_s10 = sshll.u32 %s1365_s30, 4  ;;  %p1226_p0 = scmp.ne.s32.totalorder %s1540_s1, %s1225_s13  ;;  %s34_s10 = int_to_ptr.vmem [resolvable:$true] %s33_s10 }
   0x5   :  { %p1229_p1 = scmp.lt.u32.totalorder %s1225_s13, %s1540_s1 }
   0x7   :  { %p1231_p2 = pnand %p1229_p1, %p1226_p0 }
   0x9   :  { %1234 = shalt.err (!%p1231_p2)
}
   0xa   :  { %s1235_s18 = scalar_lea.vmem %s34_s10, 2048  ;;  %p1240_p4 = scmp.lt.s32.totalorder %s34_s10, %s34_s10 }
   0xb   :  { %p1236_p3 = scmp.ne.s32.totalorder %s34_s10, %s1235_s18  ;;  %p1241_p5 = scmp.lt.s32.totalorder %s1235_s18, %s1235_s18 }
   0xd   :  { %p1242_p6 = por %p1241_p5, %p1240_p4 }
   0xf   :  { %p1243_p7 = pnand %p1242_p6, %p1236_p3 }
  0x11   :  { %1246 = shalt.err (!%p1243_p7)
}
  0x12   :  { %s1366_s19 = smov 128   ;;  %s1367_s20 = smov 8  }
  0x13   :  { %39 = dma.hbm_to_vmem [thread:$0]  %s1540_s1, 2048, %s34_s10, [#allocation6], %s1366_s19, %s1366_s19, %s1367_s20  }
  0x14   :  { %s1368_s23 = smov [#allocation8]   ;;  %s1369_s25 = smov [#allocation2]  }
  0x15   :  { %s57_s24 = sshll.u32 %s1368_s23, 4  ;;  %s24_s26 = sshll.u32 %s1369_s25, 4  ;;  %s58_s24 = int_to_ptr.vmem [resolvable:$true] %s57_s24  ;;  %s25_s26 = int_to_ptr.vmem [resolvable:$true] %s24_s26 }
  0x16   :  { %s1247_s29 = scalar_lea.hbm %s1542_s3, 4096 }
  0x17   :  { %p1248_p8 = scmp.ne.s32.totalorder %s1542_s3, %s1247_s29  ;;  %p1251_p9 = scmp.lt.u32.totalorder %s1247_s29, %s1542_s3 }
  0x19   :  { %p1253_p10 = pnand %p1251_p9, %p1248_p8 }
  0x1b   :  { %1256 = shalt.err (!%p1253_p10)
}
  0x1c   :  { %s1257_s1 = scalar_lea.vmem %s58_s24, 4096  ;;  %p1262_p12 = scmp.lt.s32.totalorder %s58_s24, %s58_s24 }
  0x1d   :  { %p1258_p11 = scmp.ne.s32.totalorder %s58_s24, %s1257_s1  ;;  %p1263_p13 = scmp.lt.s32.totalorder %s1257_s1, %s1257_s1 }
  0x1f   :  { %p1264_p0 = por %p1263_p13, %p1262_p12 }
  0x21   :  { %p1265_p1 = pnand %p1264_p0, %p1258_p11 }
  0x23   :  { %1268 = shalt.err (!%p1265_p1)
}
  0x24   :  { %63 = dma.hbm_to_vmem [thread:$0]  %s1542_s3, 4096, %s58_s24, [#allocation9], %s1366_s19, %s1366_s19, %s1367_s20  }
  0x25   :  { %s1269_s17 = scalar_lea.hbm %s1539_s0, 64 }
  0x26   :  { %p1270_p2 = scmp.ne.s32.totalorder %s1539_s0, %s1269_s17  ;;  %p1273_p3 = scmp.lt.u32.totalorder %s1269_s17, %s1539_s0 }
  0x28   :  { %p1275_p4 = pnand %p1273_p3, %p1270_p2 }
  0x2a   :  { %1278 = shalt.err (!%p1275_p4)
}
  0x2b   :  { %s1279_s25 = scalar_lea.vmem %s25_s26, 64  ;;  %p1284_p6 = scmp.lt.s32.totalorder %s25_s26, %s25_s26 }
  0x2c   :  { %p1280_p5 = scmp.ne.s32.totalorder %s25_s26, %s1279_s25  ;;  %p1285_p7 = scmp.lt.s32.totalorder %s1279_s25, %s1279_s25 }
  0x2e   :  { %p1286_p8 = por %p1285_p7, %p1284_p6 }
  0x30   :  { %p1287_p9 = pnand %p1286_p8, %p1280_p5 }
  0x32   :  { %1290 = shalt.err (!%p1287_p9)
}
  0x33   :  { %27 = dma.hbm_to_vmem [thread:$0]  %s1539_s0, 64, %s25_s26, [#allocation3]  }
  0x34   :  { %s1370_s27 = smov [#allocation7]   ;;  %s1371_s29 = smov [#allocation10]  }
  0x35   :  { %s45_s28 = sshll.u32 %s1370_s27, 4  ;;  %s69_s30 = sshll.u32 %s1371_s29, 4  ;;  %s46_s28 = int_to_ptr.vmem [resolvable:$true] %s45_s28  ;;  %s70_s30 = int_to_ptr.vmem [resolvable:$true] %s69_s30 }
  0x36   :  { %s1291_s13 = scalar_lea.hbm %s1541_s2, 4096 }
  0x37   :  { %p1292_p10 = scmp.ne.s32.totalorder %s1541_s2, %s1291_s13  ;;  %p1295_p11 = scmp.lt.u32.totalorder %s1291_s13, %s1541_s2 }
  0x39   :  { %p1297_p12 = pnand %p1295_p11, %p1292_p10 }
  0x3b   :  { %1300 = shalt.err (!%p1297_p12)
}
  0x3c   :  { %s1301_s0 = scalar_lea.vmem %s46_s28, 4096  ;;  %p1306_p0 = scmp.lt.s32.totalorder %s46_s28, %s46_s28 }
  0x3d   :  { %p1302_p13 = scmp.ne.s32.totalorder %s46_s28, %s1301_s0  ;;  %p1307_p1 = scmp.lt.s32.totalorder %s1301_s0, %s1301_s0 }
  0x3f   :  { %p1308_p2 = por %p1307_p1, %p1306_p0 }
  0x41   :  { %p1309_p3 = pnand %p1308_p2, %p1302_p13 }
  0x43   :  { %1312 = shalt.err (!%p1309_p3)
}
  0x44   :  { %51 = dma.hbm_to_vmem [thread:$0]  %s1541_s2, 4096, %s46_s28, [#allocation6], %s1366_s19, %s1366_s19, %s1367_s20  }
  0x45   :  { %s1313_s21 = scalar_lea.hbm %s1543_s4, 2048 }
  0x46   :  { %p1314_p4 = scmp.ne.s32.totalorder %s1543_s4, %s1313_s21  ;;  %p1317_p5 = scmp.lt.u32.totalorder %s1313_s21, %s1543_s4 }
  0x48   :  { %p1319_p6 = pnand %p1317_p5, %p1314_p4 }
  0x4a   :  { %1322 = shalt.err (!%p1319_p6)
}
  0x4b   :  { %s1323_s24 = scalar_lea.vmem %s70_s30, 2048  ;;  %p1328_p8 = scmp.lt.s32.totalorder %s70_s30, %s70_s30 }
  0x4c   :  { %p1324_p7 = scmp.ne.s32.totalorder %s70_s30, %s1323_s24  ;;  %p1329_p9 = scmp.lt.s32.totalorder %s1323_s24, %s1323_s24 }
  0x4e   :  { %p1330_p10 = por %p1329_p9, %p1328_p8 }
  0x50   :  { %p1331_p11 = pnand %p1330_p10, %p1324_p7 }
  0x52   :  { %1334 = shalt.err (!%p1331_p11)
}
  0x53   :  { %s1372_s2 = smov 64   ;;  %s1373_s19 = smov 4  }
  0x54   :  { %75 = dma.hbm_to_vmem [thread:$0]  %s1543_s4, 2048, %s70_s30, [#allocation9], %s1372_s2, %s1372_s2, %s1373_s19  }
  0x55   :  { %1357 = dma.done.wait [#allocation3], 64  }
  0x56   :  { %1358 = vsyncadd [#allocation3], 4294967232 }
  0x57   :  { %1359 = dma.done.wait [#allocation6], 6144  }
  0x58   :  { %1360 = vsyncadd [#allocation6], 4294961152 }
  0x59   :  { %1361 = dma.done.wait [#allocation9], 6144  }
  0x5a   :  { %1362 = vsyncadd [#allocation9], 4294961152  ;;  %v1374_v0 = vmov 0   ;;  %v1089_v1 = vld [vmem:[#allocation5 + $0x4] ss:$8 sps:$4 sm:$0xff]   ;;  %s1375_s12 = smov [#allocation11]  }
  0x5b   :  { %241 = vmatprep.mubr.bf16.mxu0 %v1374_v0  ;;  %v1091_v2 = vld [vmem:[#allocation5] ss:$8 sps:$4 sm:$0xff]   ;;  %209 = vmatprep.subr.bf16.mxu0 %v1089_v1  ;;  %v1092_v3 = vld [vmem:[#allocation5 + $0x14] ss:$8 sps:$4 sm:$0xff]   ;;  %v1094_v4 = vld [vmem:[#allocation5 + $0x10] ss:$8 sps:$4 sm:$0xff]  }
  0x5c   :  { %210 = vmatpush1.bf16.msra.mxu0 %v1091_v2  ;;  %v1095_v5 = vld [vmem:[#allocation5 + $0x24] ss:$8 sps:$4 sm:$0xff]   ;;  %v1097_v6 = vld [vmem:[#allocation5 + $0x20] ss:$8 sps:$4 sm:$0xff]   ;;  %v1098_v7 = vld [vmem:[#allocation5 + $0x34] ss:$8 sps:$4 sm:$0xff]  }
  0x5d   :  { %211 = vmatprep.subr.bf16.mxu0 %v1092_v3  ;;  %v1100_v8 = vld [vmem:[#allocation5 + $0x30] ss:$8 sps:$4 sm:$0xff]   ;;  %v1101_v9 = vld [vmem:[#allocation5 + $0x44] ss:$8 sps:$4 sm:$0xff]   ;;  %v1115_v11 = vld [vmem:[#allocation7] ss:$8 sps:$4 sm:$0xff]  }
  0x5e   :  { %v1113_v10 = vld [vmem:[#allocation7 + $0x4] ss:$8 sps:$4 sm:$0xff]   ;;  %v1116_v12 = vld [vmem:[#allocation7 + $0x14] ss:$8 sps:$4 sm:$0xff]   ;;  %v1103_v13 = vld [vmem:[#allocation5 + $0x40] ss:$8 sps:$4 sm:$0xff]  }
  0x5f   :  { %462 = vmatprep.subr.bf16.mxu1 %v1113_v10  ;;  %v1118_v14 = vld [vmem:[#allocation7 + $0x10] ss:$8 sps:$4 sm:$0xff]   ;;  %v1119_v15 = vld [vmem:[#allocation7 + $0x24] ss:$8 sps:$4 sm:$0xff]   ;;  %v1104_v16 = vld [vmem:[#allocation5 + $0x54] ss:$8 sps:$4 sm:$0xff]  }
  0x60   :  { %212 = vmatpush1.bf16.msra.mxu0 %v1094_v4  ;;  %463 = vmatpush1.bf16.msra.mxu1 %v1115_v11  ;;  %v1106_v17 = vld [vmem:[#allocation5 + $0x50] ss:$8 sps:$4 sm:$0xff]   ;;  %v1121_v18 = vld [vmem:[#allocation7 + $0x20] ss:$8 sps:$4 sm:$0xff]   ;;  %v1122_v19 = vld [vmem:[#allocation7 + $0x34] ss:$8 sps:$4 sm:$0xff]  }
  0x61   :  { %213 = vmatprep.subr.bf16.mxu0 %v1095_v5  ;;  %464 = vmatprep.subr.bf16.mxu1 %v1116_v12  ;;  %v1107_v20 = vld [vmem:[#allocation5 + $0x64] ss:$8 sps:$4 sm:$0xff]   ;;  %v1109_v21 = vld [vmem:[#allocation5 + $0x60] ss:$8 sps:$4 sm:$0xff]   ;;  %v1124_v22 = vld [vmem:[#allocation7 + $0x30] ss:$8 sps:$4 sm:$0xff]  }
  0x62   :  { %v1125_v23 = vld [vmem:[#allocation7 + $0x44] ss:$8 sps:$4 sm:$0xff]   ;;  %v1110_v24 = vld [vmem:[#allocation5 + $0x74] ss:$8 sps:$4 sm:$0xff]   ;;  %v1112_v25 = vld [vmem:[#allocation5 + $0x70] ss:$8 sps:$4 sm:$0xff]  }
  0x63   :  { %v1127_v26 = vld [vmem:[#allocation7 + $0x40] ss:$8 sps:$4 sm:$0xff]   ;;  %v1128_v27 = vld [vmem:[#allocation7 + $0x54] ss:$8 sps:$4 sm:$0xff]   ;;  %v1130_v29 = vld [vmem:[#allocation7 + $0x50] ss:$8 sps:$4 sm:$0xff]  }
  0x64   :  { %214 = vmatpush1.bf16.msra.mxu0 %v1097_v6  ;;  %465 = vmatpush1.bf16.msra.mxu1 %v1118_v14  ;;  %v100_v28 = vld [vmem:[#allocation2] sm:$0xf]  ;;  %v1131_v30 = vld [vmem:[#allocation7 + $0x64] ss:$8 sps:$4 sm:$0xff]   ;;  %v1133_v31 = vld [vmem:[#allocation7 + $0x60] ss:$8 sps:$4 sm:$0xff]   ;;  %v119_v14 = vlaneseq }
  0x65   :  { %215 = vmatprep.subr.bf16.mxu0 %v1098_v7  ;;  %466 = vmatprep.subr.bf16.mxu1 %v1119_v15  ;;  %v1134_v32 = vld [vmem:[#allocation7 + $0x74] ss:$8 sps:$4 sm:$0xff]   ;;  %v1136_v33 = vld [vmem:[#allocation7 + $0x70] ss:$8 sps:$4 sm:$0xff]   ;;  %v1137_v34 = vld [vmem:[#allocation7 + $0x84] ss:$8 sps:$4 sm:$0xff]  }
  0x66   :  { %v1139_v35 = vld [vmem:[#allocation7 + $0x80] ss:$8 sps:$4 sm:$0xff]   ;;  %v1140_v36 = vld [vmem:[#allocation7 + $0x94] ss:$8 sps:$4 sm:$0xff]   ;;  %v1142_v37 = vld [vmem:[#allocation7 + $0x90] ss:$8 sps:$4 sm:$0xff]  }
  0x67   :  { %v1143_v38 = vld [vmem:[#allocation7 + $0xa4] ss:$8 sps:$4 sm:$0xff]   ;;  %v1145_v39 = vld [vmem:[#allocation7 + $0xa0] ss:$8 sps:$4 sm:$0xff]   ;;  %v1146_v40 = vld [vmem:[#allocation7 + $0xb4] ss:$8 sps:$4 sm:$0xff]  }
  0x68   :  { %216 = vmatpush1.bf16.msra.mxu0 %v1100_v8  ;;  %467 = vmatpush1.bf16.msra.mxu1 %v1121_v18  ;;  %v1148_v41 = vld [vmem:[#allocation7 + $0xb0] ss:$8 sps:$4 sm:$0xff]   ;;  %v1149_v42 = vld [vmem:[#allocation7 + $0xc4] ss:$8 sps:$4 sm:$0xff]   ;;  %v1151_v43 = vld [vmem:[#allocation7 + $0xc0] ss:$8 sps:$4 sm:$0xff]  }
  0x69   :  { %217 = vmatprep.subr.bf16.mxu0 %v1101_v9  ;;  %468 = vmatprep.subr.bf16.mxu1 %v1122_v19  ;;  %v1152_v44 = vld [vmem:[#allocation7 + $0xd4] ss:$8 sps:$4 sm:$0xff]   ;;  %v1154_v45 = vld [vmem:[#allocation7 + $0xd0] ss:$8 sps:$4 sm:$0xff]   ;;  %v1155_v46 = vld [vmem:[#allocation7 + $0xe4] ss:$8 sps:$4 sm:$0xff]  }
  0x6a   :  { %v1157_v47 = vld [vmem:[#allocation7 + $0xe0] ss:$8 sps:$4 sm:$0xff]   ;;  %v1158_v48 = vld [vmem:[#allocation7 + $0xf4] ss:$8 sps:$4 sm:$0xff]   ;;  %v1160_v49 = vld [vmem:[#allocation7 + $0xf0] ss:$8 sps:$4 sm:$0xff]  }
  0x6b   :  { %v1161_v50 = vld [vmem:[#allocation8] ss:$8 sps:$4 sm:$0xff]   ;;  %v1163_v51 = vld [vmem:[#allocation8 + $0x4] ss:$8 sps:$4 sm:$0xff]   ;;  %v1166_v52 = vld [vmem:[#allocation8 + $0x14] ss:$8 sps:$4 sm:$0xff]  }
  0x6c   :  { %218 = vmatpush1.bf16.msra.mxu0 %v1103_v13  ;;  %469 = vmatpush1.bf16.msra.mxu1 %v1124_v22  ;;  %v1164_v53 = vld [vmem:[#allocation8 + $0x10] ss:$8 sps:$4 sm:$0xff]   ;;  %v1169_v54 = vld [vmem:[#allocation8 + $0x24] ss:$8 sps:$4 sm:$0xff]   ;;  %v1167_v55 = vld [vmem:[#allocation8 + $0x20] ss:$8 sps:$4 sm:$0xff]  }
  0x6d   :  { %219 = vmatprep.subr.bf16.mxu0 %v1104_v16  ;;  %470 = vmatprep.subr.bf16.mxu1 %v1125_v23  ;;  %v1172_v56 = vld [vmem:[#allocation8 + $0x34] ss:$8 sps:$4 sm:$0xff]   ;;  %v1170_v57 = vld [vmem:[#allocation8 + $0x30] ss:$8 sps:$4 sm:$0xff]   ;;  %v1175_v58 = vld [vmem:[#allocation8 + $0x44] ss:$8 sps:$4 sm:$0xff]  }
  0x6e   :  { %v1173_v59 = vld [vmem:[#allocation8 + $0x40] ss:$8 sps:$4 sm:$0xff]   ;;  %v1178_v60 = vld [vmem:[#allocation8 + $0x54] ss:$8 sps:$4 sm:$0xff]   ;;  %v1176_v61 = vld [vmem:[#allocation8 + $0x50] ss:$8 sps:$4 sm:$0xff]  }
  0x6f   :  { %v1181_v62 = vld [vmem:[#allocation8 + $0x64] ss:$8 sps:$4 sm:$0xff]   ;;  %v1179_v63 = vld [vmem:[#allocation8 + $0x60] ss:$8 sps:$4 sm:$0xff]   ;;  %v1184_v0 = vld [vmem:[#allocation8 + $0x74] ss:$8 sps:$4 sm:$0xff]  }
  0x70   :  { %220 = vmatpush1.bf16.msra.mxu0 %v1106_v17  ;;  %471 = vmatpush1.bf16.msra.mxu1 %v1127_v26  ;;  %v1182_v1 = vld [vmem:[#allocation8 + $0x70] ss:$8 sps:$4 sm:$0xff]   ;;  %v1187_v2 = vld [vmem:[#allocation8 + $0x84] ss:$8 sps:$4 sm:$0xff]   ;;  %v1185_v3 = vld [vmem:[#allocation8 + $0x80] ss:$8 sps:$4 sm:$0xff]  }
  0x71   :  { %221 = vmatprep.subr.bf16.mxu0 %v1107_v20  ;;  %472 = vmatprep.subr.bf16.mxu1 %v1128_v27  ;;  %v1190_v4 = vld [vmem:[#allocation8 + $0x94] ss:$8 sps:$4 sm:$0xff]   ;;  %v1188_v5 = vld [vmem:[#allocation8 + $0x90] ss:$8 sps:$4 sm:$0xff]   ;;  %v1193_v6 = vld [vmem:[#allocation8 + $0xa4] ss:$8 sps:$4 sm:$0xff]  }
  0x72   :  { %v1191_v7 = vld [vmem:[#allocation8 + $0xa0] ss:$8 sps:$4 sm:$0xff]   ;;  %v1196_v8 = vld [vmem:[#allocation8 + $0xb4] ss:$8 sps:$4 sm:$0xff]   ;;  %v1194_v9 = vld [vmem:[#allocation8 + $0xb0] ss:$8 sps:$4 sm:$0xff]  }
  0x73   :  { %v1199_v10 = vld [vmem:[#allocation8 + $0xc4] ss:$8 sps:$4 sm:$0xff]   ;;  %v1197_v11 = vld [vmem:[#allocation8 + $0xc0] ss:$8 sps:$4 sm:$0xff]   ;;  %v1202_v12 = vld [vmem:[#allocation8 + $0xd4] ss:$8 sps:$4 sm:$0xff]  }
  0x74   :  { %222 = vmatpush1.bf16.msra.mxu0 %v1109_v21  ;;  %473 = vmatpush1.bf16.msra.mxu1 %v1130_v29  ;;  %v1200_v13 = vld [vmem:[#allocation8 + $0xd0] ss:$8 sps:$4 sm:$0xff]   ;;  %v120_v15 = vshrl.u32 %v119_v14, 7  ;;  %v117_v17 = vld [vmem:[%s1544_s5] sm:$0x3]  ;;  %s948_s13 = sshll.u32 %s1375_s12, 4  ;;  %s949_s13 = int_to_ptr.vmem [resolvable:$true] %s948_s13 }
  0x75   :  { %223 = vmatprep.subr.bf16.mxu0 %v1110_v24  ;;  %474 = vmatprep.subr.bf16.mxu1 %v1131_v30  ;;  %s1335_s1 = scalar_lea.vmem %s949_s13, 128  ;;  %p1340_p13 = scmp.lt.s32.totalorder %s949_s13, %s949_s13 }
  0x76   :  { %v1495_v16 = vsub.s32 0, %v120_v15  ;;  %v1500_v18 = vsub.s32 1, %v120_v15  ;;  %p1336_p12 = scmp.ne.s32.totalorder %s949_s13, %s1335_s1  ;;  %p1341_p0 = scmp.lt.s32.totalorder %s1335_s1, %s1335_s1 }
  0x78   :  { %224 = vmatpush1.bf16.msra.mxu0 %v1112_v25  ;;  %475 = vmatpush1.bf16.msra.mxu1 %v1133_v31  ;;  %v122_v19 = vrot.slane %v117_v17, %v1495_v16  ;;  %v126_v20 = vrot.slane %v117_v17, %v1500_v18  ;;  %p1342_p1 = por %p1341_p0, %p1340_p13 }
  0x79   :  { %476 = vmatprep.subr.bf16.mxu1 %v1134_v32  ;;  %715 = vmatprep.subr.bf16.mxu0 %v1163_v51 }
  0x7a   :  { %p1343_p2 = pnand %p1342_p1, %p1336_p12 }
  0x7b   :  { %242 = vmatmul.mubr.bf16.vlgmr.msra.gmra.mrb[0].mxu0 %v100_v28 }
  0x7c   :  { %477 = vmatpush1.bf16.msra.mxu1 %v1136_v33  ;;  %716 = vmatpush1.bf16.msra.mxu0 %v1161_v50  ;;  %v1205_v33 = vld [vmem:[#allocation8 + $0xe4] ss:$8 sps:$4 sm:$0xff]  }
  0x7d   :  { %478 = vmatprep.subr.bf16.mxu1 %v1137_v34  ;;  %717 = vmatprep.subr.bf16.mxu0 %v1166_v52  ;;  %v1203_v34 = vld [vmem:[#allocation8 + $0xe0] ss:$8 sps:$4 sm:$0xff]  }
  0x80   :  { %479 = vmatpush1.bf16.msra.mxu1 %v1139_v35  ;;  %718 = vmatpush1.bf16.msra.mxu0 %v1164_v53  ;;  %v1208_v35 = vld [vmem:[#allocation8 + $0xf4] ss:$8 sps:$4 sm:$0xff]  }
  0x81   :  { %480 = vmatprep.subr.bf16.mxu1 %v1140_v36  ;;  %719 = vmatprep.subr.bf16.mxu0 %v1169_v54  ;;  %v1206_v36 = vld [vmem:[#allocation8 + $0xf0] ss:$8 sps:$4 sm:$0xff]  }
  0x84   :  { %481 = vmatpush1.bf16.msra.mxu1 %v1142_v37  ;;  %720 = vmatpush1.bf16.msra.mxu0 %v1167_v55  ;;  %v1209_v37 = vld [vmem:[#allocation10 + $0x40] sm:$0xff]  }
  0x85   :  { %482 = vmatprep.subr.bf16.mxu1 %v1143_v38  ;;  %721 = vmatprep.subr.bf16.mxu0 %v1172_v56  ;;  %v1210_v38 = vld [vmem:[#allocation10] sm:$0xff]  }
  0x88   :  { %483 = vmatpush1.bf16.msra.mxu1 %v1145_v39  ;;  %722 = vmatpush1.bf16.msra.mxu0 %v1170_v57  ;;  %v1211_v39 = vld [vmem:[#allocation10 + $0x48] sm:$0xff]  }
  0x89   :  { %484 = vmatprep.subr.bf16.mxu1 %v1146_v40  ;;  %723 = vmatprep.subr.bf16.mxu0 %v1175_v58  ;;  %v1212_v40 = vld [vmem:[#allocation10 + $0x8] sm:$0xff]  }
  0x8c   :  { %485 = vmatpush1.bf16.msra.mxu1 %v1148_v41  ;;  %724 = vmatpush1.bf16.msra.mxu0 %v1173_v59  ;;  %v1213_v41 = vld [vmem:[#allocation10 + $0x50] sm:$0xff]  }
  0x8d   :  { %486 = vmatprep.subr.bf16.mxu1 %v1149_v42  ;;  %725 = vmatprep.subr.bf16.mxu0 %v1178_v60  ;;  %v1214_v42 = vld [vmem:[#allocation10 + $0x10] sm:$0xff]  }
  0x90   :  { %487 = vmatpush1.bf16.msra.mxu1 %v1151_v43  ;;  %726 = vmatpush1.bf16.msra.mxu0 %v1176_v61  ;;  %v1215_v43 = vld [vmem:[#allocation10 + $0x58] sm:$0xff]  }
  0x91   :  { %488 = vmatprep.subr.bf16.mxu1 %v1152_v44  ;;  %727 = vmatprep.subr.bf16.mxu0 %v1181_v62  ;;  %v1216_v44 = vld [vmem:[#allocation10 + $0x18] sm:$0xff]   ;;  %v1219_v62 = vld [vmem:[#allocation10 + $0x68] sm:$0xff]  }
  0x94   :  { %489 = vmatpush1.bf16.msra.mxu1 %v1154_v45  ;;  %728 = vmatpush1.bf16.msra.mxu0 %v1179_v63  ;;  %v1217_v45 = vld [vmem:[#allocation10 + $0x60] sm:$0xff]   ;;  %v1220_v63 = vld [vmem:[#allocation10 + $0x28] sm:$0xff]  }
  0x95   :  { %490 = vmatprep.subr.bf16.mxu1 %v1155_v46  ;;  %729 = vmatprep.subr.bf16.mxu0 %v1184_v0  ;;  %v1218_v46 = vld [vmem:[#allocation10 + $0x20] sm:$0xff]   ;;  %v1221_v0 = vld [vmem:[#allocation10 + $0x70] sm:$0xff]  }
  0x98   :  { %491 = vmatpush1.bf16.msra.mxu1 %v1157_v47  ;;  %730 = vmatpush1.bf16.msra.mxu0 %v1182_v1  ;;  %v290_v47 = vld [vmem:[%s1545_s6] sm:$0x3]  ;;  %v1222_v1 = vld [vmem:[#allocation10 + $0x30] sm:$0xff]  }
  0x99   :  { %492 = vmatprep.subr.bf16.mxu1 %v1158_v48  ;;  %731 = vmatprep.subr.bf16.mxu0 %v1187_v2  ;;  %v295_v48 = vrot.slane %v290_v47, %v1495_v16  ;;  %v1223_v2 = vld [vmem:[#allocation10 + $0x78] sm:$0xff]  }
  0x9c   :  { %493 = vmatpush1.bf16.msra.mxu1 %v1160_v49  ;;  %732 = vmatpush1.bf16.msra.mxu0 %v1185_v3  ;;  %v299_v49 = vrot.slane %v290_v47, %v1500_v18  ;;  %v1224_v3 = vld [vmem:[#allocation10 + $0x38] sm:$0xff]  }
  0x9d   :  { %733 = vmatprep.subr.bf16.mxu0 %v1190_v4  ;;  %1056 = vmatprep.subr.bf16.mxu1 %v1209_v37  ;;  %v543_v4 = vld [vmem:[%s1546_s7] sm:$0x3] }
  0xa0   :  { %734 = vmatpush1.bf16.msra.mxu0 %v1188_v5  ;;  %v548_v5 = vrot.slane %v543_v4, %v1495_v16 }
  0xa1   :  { %735 = vmatprep.subr.bf16.mxu0 %v1193_v6  ;;  %v552_v6 = vrot.slane %v543_v4, %v1500_v18 }
  0xa4   :  { %736 = vmatpush1.bf16.msra.mxu0 %v1191_v7 }
  0xa5   :  { %737 = vmatprep.subr.bf16.mxu0 %v1196_v8 }
  0xa8   :  { %738 = vmatpush1.bf16.msra.mxu0 %v1194_v9 }
  0xa9   :  { %739 = vmatprep.subr.bf16.mxu0 %v1199_v10 }
  0xac   :  { %740 = vmatpush1.bf16.msra.mxu0 %v1197_v11 }
  0xad   :  { %741 = vmatprep.subr.bf16.mxu0 %v1202_v12 }
  0xb0   :  { %742 = vmatpush1.bf16.msra.mxu0 %v1200_v13 }
  0xb1   :  { %743 = vmatprep.subr.bf16.mxu0 %v1205_v33 }
  0xb4   :  { %744 = vmatpush1.bf16.msra.mxu0 %v1203_v34 }
  0xb5   :  { %745 = vmatprep.subr.bf16.mxu0 %v1208_v35 }
  0xb8   :  { %746 = vmatpush1.bf16.msra.mxu0 %v1206_v36 }
 0x14e   :  { %v243_v21 = vpop.f32.mrb[0].mxu0 }
 0x14f   :  { %v244_v22 = vadd.f32 %v243_v21, %v122_v19  ;;  %v245_v23 = vpop.f32.mrb[1].mxu0 }
 0x150   :  { %v246_v24 = vadd.f32 %v245_v23, %v126_v20  ;;  %v247_v25 = vpop.f32.mrb[2].mxu0 }
 0x151   :  { %vm250_vm0 = vcmp.gt.f32.partialorder %v244_v22, 0.0  ;;  %v252_v26 = vmul.f32 0.01, %v244_v22  ;;  %v248_v27 = vpop.f32.mrb[3].mxu0 }
 0x152   :  { %v253_v28 = vmul.f32 0.01, %v246_v24  ;;  %vm251_vm1 = vcmp.gt.f32.partialorder %v246_v24, 0.0 }
 0x153   :  { %v1504_v29 = vsel %vm250_vm0, %v244_v22, %v252_v26  ;;  %v1039_v22 = vld [vmem:[%s1547_s8] ss:$0 sm:$0xff] }
 0x154   :  { %v1506_v30 = vsel %vm251_vm1, %v246_v24, %v253_v28  ;;  %v256_v32 = vpack.c.bf16 %v1504_v29, %v1504_v29 }
 0x155   :  { %v257_v31 = vpack.c.bf16 %v1506_v30, %v1506_v30 }
 0x157   :  { %494 = vmatprep.mubr.bf16.mxu1 %v257_v31 }
 0x158   :  { %495 = vmatmul.mubr.bf16.vlgmr.msra.gmra.mrb[0].mxu1 %v256_v32 }
 0x159   :  { %1057 = vmatpush3.bf16.msra.mxu1 %v1210_v38 }
 0x15a   :  { %1058 = vmatprep.subr.bf16.mxu1 %v1211_v39 }
 0x15d   :  { %1059 = vmatpush3.bf16.msra.mxu1 %v1212_v40 }
 0x15e   :  { %1060 = vmatprep.subr.bf16.mxu1 %v1213_v41 }
 0x161   :  { %1061 = vmatpush3.bf16.msra.mxu1 %v1214_v42 }
 0x162   :  { %1062 = vmatprep.subr.bf16.mxu1 %v1215_v43 }
 0x165   :  { %1063 = vmatpush3.bf16.msra.mxu1 %v1216_v44 }
 0x166   :  { %1064 = vmatprep.subr.bf16.mxu1 %v1217_v45 }
 0x169   :  { %1065 = vmatpush3.bf16.msra.mxu1 %v1218_v46 }
 0x16a   :  { %1066 = vmatprep.subr.bf16.mxu1 %v1219_v62 }
 0x16d   :  { %1067 = vmatpush3.bf16.msra.mxu1 %v1220_v63 }
 0x16e   :  { %1068 = vmatprep.subr.bf16.mxu1 %v1221_v0 }
 0x171   :  { %1069 = vmatpush3.bf16.msra.mxu1 %v1222_v1 }
 0x172   :  { %1070 = vmatprep.subr.bf16.mxu1 %v1223_v2 }
 0x175   :  { %1071 = vmatpush3.bf16.msra.mxu1 %v1224_v3 }
 0x22b   :  { %v496_v50 = vpop.f32.mrb[0].mxu1 }
 0x22c   :  { %v497_v51 = vadd.f32 %v496_v50, %v295_v48  ;;  %v498_v52 = vpop.f32.mrb[1].mxu1 }
 0x22d   :  { %v499_v53 = vadd.f32 %v498_v52, %v299_v49  ;;  %v500_v54 = vpop.f32.mrb[2].mxu1 }
 0x22e   :  { %vm503_vm2 = vcmp.gt.f32.partialorder %v497_v51, 0.0  ;;  %v505_v55 = vmul.f32 0.01, %v497_v51  ;;  %v501_v56 = vpop.f32.mrb[3].mxu1 }
 0x22f   :  { %vm504_vm3 = vcmp.gt.f32.partialorder %v499_v53, 0.0  ;;  %v506_v57 = vmul.f32 0.01, %v499_v53 }
 0x230   :  { %v507_v58 = vsel %vm503_vm2, %v497_v51, %v505_v55 }
 0x231   :  { %v508_v59 = vsel %vm504_vm3, %v499_v53, %v506_v57  ;;  %v509_v61 = vpack.c.bf16 %v507_v58, %v507_v58 }
 0x232   :  { %v510_v60 = vpack.c.bf16 %v508_v59, %v508_v59 }
 0x234   :  { %747 = vmatprep.mubr.bf16.mxu0 %v510_v60 }
 0x235   :  { %748 = vmatmul.mubr.bf16.vlgmr.msra.gmra.mrb[4].mxu0 %v509_v61 }
 0x308   :  { %v749_v7 = vpop.f32.mrb[4].mxu0 }
 0x309   :  { %v750_v8 = vadd.f32 %v749_v7, %v548_v5  ;;  %v751_v9 = vpop.f32.mrb[5].mxu0 }
 0x30a   :  { %v752_v10 = vadd.f32 %v751_v9, %v552_v6  ;;  %v753_v11 = vpop.f32.mrb[6].mxu0 }
 0x30b   :  { %v756_v12 = vadd.f32 %v750_v8, %v1504_v29  ;;  %v754_v13 = vpop.f32.mrb[7].mxu0 }
 0x30c   :  { %v757_v14 = vadd.f32 %v752_v10, %v1506_v30 }
 0x30d   :  { %vm758_vm4 = vcmp.gt.f32.partialorder %v756_v12, 0.0  ;;  %v760_v15 = vmul.f32 0.01, %v756_v12 }
 0x30e   :  { %v761_v17 = vmul.f32 0.01, %v757_v14  ;;  %vm759_vm5 = vcmp.gt.f32.partialorder %v757_v14, 0.0 }
 0x30f   :  { %v762_v19 = vsel %vm758_vm4, %v756_v12, %v760_v15 }
 0x310   :  { %v763_v20 = vsel %vm759_vm5, %v757_v14, %v761_v17  ;;  %v764_v16 = vpack.c.bf16 %v762_v19, %v762_v19 }
 0x311   :  { %v765_v21 = vpack.c.bf16 %v763_v20, %v763_v20 }
 0x313   :  { %933 = vmatprep.mubr.bf16.mxu1 %v765_v21 }
 0x314   :  { %934 = vmatmul.mubr.bf16.vlgmr.msra.gmra.mrb[4].mxu1 %v764_v16 }
 0x3e7   :  { %v1072_v18 = vpop.f32.mrb[4].mxu1 }
 0x3e8   :  { %v1073_v23 = vpop.f32.mrb[5].mxu1 }
 0x3e9   :  { %v1074_v24 = vadd.f32 %v1073_v23, %v1072_v18  ;;  %v1075_v25 = vpop.f32.mrb[6].mxu1 }
 0x3ea   :  { %v1076_v26 = vpop.f32.mrb[7].mxu1 }
 0x3eb   :  { %v936_v27 = vadd.f32 %v1074_v24, %v1039_v22 }
 0x3ed   :  { %941 = vst [vmem:[#allocation11] sm:$0xff] %v936_v27 }
 0x3ee   :  { %1346 = shalt.err (!%p1343_p2)
}
 0x3ef   :  { %s1347_s8 = scalar_lea.hbm %s1548_s9, 128 }
 0x3f0   :  { %p1348_p3 = scmp.ne.s32.totalorder %s1548_s9, %s1347_s8  ;;  %p1351_p4 = scmp.lt.u32.totalorder %s1347_s8, %s1548_s9 }
 0x3f2   :  { %p1353_p5 = pnand %p1351_p4, %p1348_p3 }
 0x3f4   :  { %1356 = shalt.err (!%p1353_p5)
}
 0x3f5   :  { %951 = dma.vmem_to_hbm [thread:$0]  %s949_s13, 128, %s1548_s9, [#allocation4]  }
 0x3f6   :  { %1363 = dma.done.wait [#allocation4], 128  }
 0x3f7   :  { %1364 = vsyncadd [#allocation4], 4294967168 }
 0x3f8   :  { %955 = vsyncpa [#allocation3], 1 }
 0x3f9   :  { %956 = vsyncpa [#allocation6], 1 }
 0x3fa   :  { %957 = vsyncpa [#allocation9], 1 }
 0x3fb   :  { %958 = vsyncpa [#allocation4], 1 }

// kernel: tpu_custom_call.1
= control target key start
LH: loop header
LB: loop body
LE: loop exit
PB: predicated region body
PF: predicated region fallthrough
CT: control target
= control target key end

     0   :  { %14 = vsyncpa [#allocation3], 0  ;;  %s1539_s0 = inlined_call_operand.hbm [shape: bf16[8,128], index: 0, kind: input, shape index: {}]   ;;  %s1540_s1 = inlined_call_operand.hbm [shape: bf16[128,256], index: 1, kind: input, shape index: {}]   ;;  %s1541_s2 = inlined_call_operand.hbm [shape: bf16[256,256], index: 2, kind: input, shape index: {}]   ;;  %s1542_s3 = inlined_call_operand.hbm [shape: bf16[256,256], index: 3, kind: input, shape index: {}]   ;;  %s1543_s4 = inlined_call_operand.hbm [shape: bf16[256,128], index: 4, kind: input, shape index: {}]   ;;  %s1544_s5 = inlined_call_operand.vmem [shape: f32[1,256], index: 5, kind: input, shape index: {}]   ;;  %s1545_s6 = inlined_call_operand.vmem [shape: f32[1,256], index: 6, kind: input, shape index: {}]   ;;  %s1546_s7 = inlined_call_operand.vmem [shape: f32[1,256], index: 7, kind: input, shape index: {}]   ;;  %s1547_s8 = inlined_call_operand.vmem [shape: f32[1,128], index: 8, kind: input, shape index: {}]   ;;  %s1548_s9 = inlined_call_operand.hbm [shape: f32[8,128], index: 9, kind: output, shape index: {}]  }
   0x1   :  { %15 = vsyncpa [#allocation6], 0 }
   0x2   :  { %16 = vsyncpa [#allocation9], 0 }
   0x3   :  { %17 = vsyncpa [#allocation4], 0  ;;  %s1365_s30 = smov [#allocation5]   ;;  %s1225_s13 = scalar_lea.hbm %s1540_s1, 2048 }
   0x4   :  { %s33_s10 = sshll.u32 %s1365_s30, 4  ;;  %p1226_p0 = scmp.ne.s32.totalorder %s1540_s1, %s1225_s13  ;;  %s34_s10 = int_to_ptr.vmem [resolvable:$true] %s33_s10 }
   0x5   :  { %p1229_p1 = scmp.lt.u32.totalorder %s1225_s13, %s1540_s1 }
   0x7   :  { %p1231_p2 = pnand %p1229_p1, %p1226_p0 }
   0x9   :  { %1234 = shalt.err (!%p1231_p2)
}
   0xa   :  { %s1235_s18 = scalar_lea.vmem %s34_s10, 2048  ;;  %p1240_p4 = scmp.lt.s32.totalorder %s34_s10, %s34_s10 }
   0xb   :  { %p1236_p3 = scmp.ne.s32.totalorder %s34_s10, %s1235_s18  ;;  %p1241_p5 = scmp.lt.s32.totalorder %s1235_s18, %s1235_s18 }
   0xd   :  { %p1242_p6 = por %p1241_p5, %p1240_p4 }
   0xf   :  { %p1243_p7 = pnand %p1242_p6, %p1236_p3 }
  0x11   :  { %1246 = shalt.err (!%p1243_p7)
}
  0x12   :  { %s1366_s19 = smov 128   ;;  %s1367_s20 = smov 8  }
  0x13   :  { %39 = dma.hbm_to_vmem [thread:$0]  %s1540_s1, 2048, %s34_s10, [#allocation6], %s1366_s19, %s1366_s19, %s1367_s20  }
  0x14   :  { %s1368_s23 = smov [#allocation8]   ;;  %s1369_s25 = smov [#allocation2]  }
  0x15   :  { %s57_s24 = sshll.u32 %s1368_s23, 4  ;;  %s24_s26 = sshll.u32 %s1369_s25, 4  ;;  %s58_s24 = int_to_ptr.vmem [resolvable:$true] %s57_s24  ;;  %s25_s26 = int_to_ptr.vmem [resolvable:$true] %s24_s26 }
  0x16   :  { %s1247_s29 = scalar_lea.hbm %s1542_s3, 4096 }
  0x17   :  { %p1248_p8 = scmp.ne.s32.totalorder %s1542_s3, %s1247_s29  ;;  %p1251_p9 = scmp.lt.u32.totalorder %s1247_s29, %s1542_s3 }
  0x19   :  { %p1253_p10 = pnand %p1251_p9, %p1248_p8 }
  0x1b   :  { %1256 = shalt.err (!%p1253_p10)
}
  0x1c   :  { %s1257_s1 = scalar_lea.vmem %s58_s24, 4096  ;;  %p1262_p12 = scmp.lt.s32.totalorder %s58_s24, %s58_s24 }
  0x1d   :  { %p1258_p11 = scmp.ne.s32.totalorder %s58_s24, %s1257_s1  ;;  %p1263_p13 = scmp.lt.s32.totalorder %s1257_s1, %s1257_s1 }
  0x1f   :  { %p1264_p0 = por %p1263_p13, %p1262_p12 }
  0x21   :  { %p1265_p1 = pnand %p1264_p0, %p1258_p11 }
  0x23   :  { %1268 = shalt.err (!%p1265_p1)
}
  0x24   :  { %63 = dma.hbm_to_vmem [thread:$0]  %s1542_s3, 4096, %s58_s24, [#allocation9], %s1366_s19, %s1366_s19, %s1367_s20  }
  0x25   :  { %s1269_s17 = scalar_lea.hbm %s1539_s0, 64 }
  0x26   :  { %p1270_p2 = scmp.ne.s32.totalorder %s1539_s0, %s1269_s17  ;;  %p1273_p3 = scmp.lt.u32.totalorder %s1269_s17, %s1539_s0 }
  0x28   :  { %p1275_p4 = pnand %p1273_p3, %p1270_p2 }
  0x2a   :  { %1278 = shalt.err (!%p1275_p4)
}
  0x2b   :  { %s1279_s25 = scalar_lea.vmem %s25_s26, 64  ;;  %p1284_p6 = scmp.lt.s32.totalorder %s25_s26, %s25_s26 }
  0x2c   :  { %p1280_p5 = scmp.ne.s32.totalorder %s25_s26, %s1279_s25  ;;  %p1285_p7 = scmp.lt.s32.totalorder %s1279_s25, %s1279_s25 }
  0x2e   :  { %p1286_p8 = por %p1285_p7, %p1284_p6 }
  0x30   :  { %p1287_p9 = pnand %p1286_p8, %p1280_p5 }
  0x32   :  { %1290 = shalt.err (!%p1287_p9)
}
  0x33   :  { %27 = dma.hbm_to_vmem [thread:$0]  %s1539_s0, 64, %s25_s26, [#allocation3]  }
  0x34   :  { %s1370_s27 = smov [#allocation7]   ;;  %s1371_s29 = smov [#allocation10]  }
  0x35   :  { %s45_s28 = sshll.u32 %s1370_s27, 4  ;;  %s69_s30 = sshll.u32 %s1371_s29, 4  ;;  %s46_s28 = int_to_ptr.vmem [resolvable:$true] %s45_s28  ;;  %s70_s30 = int_to_ptr.vmem [resolvable:$true] %s69_s30 }
  0x36   :  { %s1291_s13 = scalar_lea.hbm %s1541_s2, 4096 }
  0x37   :  { %p1292_p10 = scmp.ne.s32.totalorder %s1541_s2, %s1291_s13  ;;  %p1295_p11 = scmp.lt.u32.totalorder %s1291_s13, %s1541_s2 }
  0x39   :  { %p1297_p12 = pnand %p1295_p11, %p1292_p10 }
  0x3b   :  { %1300 = shalt.err (!%p1297_p12)
}
  0x3c   :  { %s1301_s0 = scalar_lea.vmem %s46_s28, 4096  ;;  %p1306_p0 = scmp.lt.s32.totalorder %s46_s28, %s46_s28 }
  0x3d   :  { %p1302_p13 = scmp.ne.s32.totalorder %s46_s28, %s1301_s0  ;;  %p1307_p1 = scmp.lt.s32.totalorder %s1301_s0, %s1301_s0 }
  0x3f   :  { %p1308_p2 = por %p1307_p1, %p1306_p0 }
  0x41   :  { %p1309_p3 = pnand %p1308_p2, %p1302_p13 }
  0x43   :  { %1312 = shalt.err (!%p1309_p3)
}
  0x44   :  { %51 = dma.hbm_to_vmem [thread:$0]  %s1541_s2, 4096, %s46_s28, [#allocation6], %s1366_s19, %s1366_s19, %s1367_s20  }
  0x45   :  { %s1313_s21 = scalar_lea.hbm %s1543_s4, 2048 }
  0x46   :  { %p1314_p4 = scmp.ne.s32.totalorder %s1543_s4, %s1313_s21  ;;  %p1317_p5 = scmp.lt.u32.totalorder %s1313_s21, %s1543_s4 }
  0x48   :  { %p1319_p6 = pnand %p1317_p5, %p1314_p4 }
  0x4a   :  { %1322 = shalt.err (!%p1319_p6)
}
  0x4b   :  { %s1323_s24 = scalar_lea.vmem %s70_s30, 2048  ;;  %p1328_p8 = scmp.lt.s32.totalorder %s70_s30, %s70_s30 }
  0x4c   :  { %p1324_p7 = scmp.ne.s32.totalorder %s70_s30, %s1323_s24  ;;  %p1329_p9 = scmp.lt.s32.totalorder %s1323_s24, %s1323_s24 }
  0x4e   :  { %p1330_p10 = por %p1329_p9, %p1328_p8 }
  0x50   :  { %p1331_p11 = pnand %p1330_p10, %p1324_p7 }
  0x52   :  { %1334 = shalt.err (!%p1331_p11)
}
  0x53   :  { %s1372_s2 = smov 64   ;;  %s1373_s19 = smov 4  }
  0x54   :  { %75 = dma.hbm_to_vmem [thread:$0]  %s1543_s4, 2048, %s70_s30, [#allocation9], %s1372_s2, %s1372_s2, %s1373_s19  }
  0x55   :  { %1357 = dma.done.wait [#allocation3], 64  }
  0x56   :  { %1358 = vsyncadd [#allocation3], 4294967232 }
  0x57   :  { %1359 = dma.done.wait [#allocation6], 6144  }
  0x58   :  { %1360 = vsyncadd [#allocation6], 4294961152 }
  0x59   :  { %1361 = dma.done.wait [#allocation9], 6144  }
  0x5a   :  { %1362 = vsyncadd [#allocation9], 4294961152  ;;  %v1374_v0 = vmov 0   ;;  %v1089_v1 = vld [vmem:[#allocation5 + $0x4] ss:$8 sps:$4 sm:$0xff]   ;;  %s1375_s12 = smov [#allocation11]  }
  0x5b   :  { %241 = vmatprep.mubr.bf16.mxu0 %v1374_v0  ;;  %v1091_v2 = vld [vmem:[#allocation5] ss:$8 sps:$4 sm:$0xff]   ;;  %209 = vmatprep.subr.bf16.mxu0 %v1089_v1  ;;  %v1092_v3 = vld [vmem:[#allocation5 + $0x14] ss:$8 sps:$4 sm:$0xff]   ;;  %v1094_v4 = vld [vmem:[#allocation5 + $0x10] ss:$8 sps:$4 sm:$0xff]  }
  0x5c   :  { %210 = vmatpush1.bf16.msra.mxu0 %v1091_v2  ;;  %v1095_v5 = vld [vmem:[#allocation5 + $0x24] ss:$8 sps:$4 sm:$0xff]   ;;  %v1097_v6 = vld [vmem:[#allocation5 + $0x20] ss:$8 sps:$4 sm:$0xff]   ;;  %v1098_v7 = vld [vmem:[#allocation5 + $0x34] ss:$8 sps:$4 sm:$0xff]  }
  0x5d   :  { %211 = vmatprep.subr.bf16.mxu0 %v1092_v3  ;;  %v1100_v8 = vld [vmem:[#allocation5 + $0x30] ss:$8 sps:$4 sm:$0xff]   ;;  %v1101_v9 = vld [vmem:[#allocation5 + $0x44] ss:$8 sps:$4 sm:$0xff]   ;;  %v1115_v11 = vld [vmem:[#allocation7] ss:$8 sps:$4 sm:$0xff]  }
  0x5e   :  { %v1113_v10 = vld [vmem:[#allocation7 + $0x4] ss:$8 sps:$4 sm:$0xff]   ;;  %v1116_v12 = vld [vmem:[#allocation7 + $0x14] ss:$8 sps:$4 sm:$0xff]   ;;  %v1103_v13 = vld [vmem:[#allocation5 + $0x40] ss:$8 sps:$4 sm:$0xff]  }
  0x5f   :  { %462 = vmatprep.subr.bf16.mxu1 %v1113_v10  ;;  %v1118_v14 = vld [vmem:[#allocation7 + $0x10] ss:$8 sps:$4 sm:$0xff]   ;;  %v1119_v15 = vld [vmem:[#allocation7 + $0x24] ss:$8 sps:$4 sm:$0xff]   ;;  %v1104_v16 = vld [vmem:[#allocation5 + $0x54] ss:$8 sps:$4 sm:$0xff]  }
  0x60   :  { %212 = vmatpush1.bf16.msra.mxu0 %v1094_v4  ;;  %463 = vmatpush1.bf16.msra.mxu1 %v1115_v11  ;;  %v1106_v17 = vld [vmem:[#allocation5 + $0x50] ss:$8 sps:$4 sm:$0xff]   ;;  %v1121_v18 = vld [vmem:[#allocation7 + $0x20] ss:$8 sps:$4 sm:$0xff]   ;;  %v1122_v19 = vld [vmem:[#allocation7 + $0x34] ss:$8 sps:$4 sm:$0xff]  }
  0x61   :  { %213 = vmatprep.subr.bf16.mxu0 %v1095_v5  ;;  %464 = vmatprep.subr.bf16.mxu1 %v1116_v12  ;;  %v1107_v20 = vld [vmem:[#allocation5 + $0x64] ss:$8 sps:$4 sm:$0xff]   ;;  %v1109_v21 = vld [vmem:[#allocation5 + $0x60] ss:$8 sps:$4 sm:$0xff]   ;;  %v1124_v22 = vld [vmem:[#allocation7 + $0x30] ss:$8 sps:$4 sm:$0xff]  }
  0x62   :  { %v1125_v23 = vld [vmem:[#allocation7 + $0x44] ss:$8 sps:$4 sm:$0xff]   ;;  %v1110_v24 = vld [vmem:[#allocation5 + $0x74] ss:$8 sps:$4 sm:$0xff]   ;;  %v1112_v25 = vld [vmem:[#allocation5 + $0x70] ss:$8 sps:$4 sm:$0xff]  }
  0x63   :  { %v1127_v26 = vld [vmem:[#allocation7 + $0x40] ss:$8 sps:$4 sm:$0xff]   ;;  %v1128_v27 = vld [vmem:[#allocation7 + $0x54] ss:$8 sps:$4 sm:$0xff]   ;;  %v1130_v29 = vld [vmem:[#allocation7 + $0x50] ss:$8 sps:$4 sm:$0xff]  }
  0x64   :  { %214 = vmatpush1.bf16.msra.mxu0 %v1097_v6  ;;  %465 = vmatpush1.bf16.msra.mxu1 %v1118_v14  ;;  %v100_v28 = vld [vmem:[#allocation2] sm:$0xf]  ;;  %v1131_v30 = vld [vmem:[#allocation7 + $0x64] ss:$8 sps:$4 sm:$0xff]   ;;  %v1133_v31 = vld [vmem:[#allocation7 + $0x60] ss:$8 sps:$4 sm:$0xff]   ;;  %v119_v14 = vlaneseq }
  0x65   :  { %215 = vmatprep.subr.bf16.mxu0 %v1098_v7  ;;  %466 = vmatprep.subr.bf16.mxu1 %v1119_v15  ;;  %v1134_v32 = vld [vmem:[#allocation7 + $0x74] ss:$8 sps:$4 sm:$0xff]   ;;  %v1136_v33 = vld [vmem:[#allocation7 + $0x70] ss:$8 sps:$4 sm:$0xff]   ;;  %v1137_v34 = vld [vmem:[#allocation7 + $0x84] ss:$8 sps:$4 sm:$0xff]  }
  0x66   :  { %v1139_v35 = vld [vmem:[#allocation7 + $0x80] ss:$8 sps:$4 sm:$0xff]   ;;  %v1140_v36 = vld [vmem:[#allocation7 + $0x94] ss:$8 sps:$4 sm:$0xff]   ;;  %v1142_v37 = vld [vmem:[#allocation7 + $0x90] ss:$8 sps:$4 sm:$0xff]  }
  0x67   :  { %v1143_v38 = vld [vmem:[#allocation7 + $0xa4] ss:$8 sps:$4 sm:$0xff]   ;;  %v1145_v39 = vld [vmem:[#allocation7 + $0xa0] ss:$8 sps:$4 sm:$0xff]   ;;  %v1146_v40 = vld [vmem:[#allocation7 + $0xb4] ss:$8 sps:$4 sm:$0xff]  }
  0x68   :  { %216 = vmatpush1.bf16.msra.mxu0 %v1100_v8  ;;  %467 = vmatpush1.bf16.msra.mxu1 %v1121_v18  ;;  %v1148_v41 = vld [vmem:[#allocation7 + $0xb0] ss:$8 sps:$4 sm:$0xff]   ;;  %v1149_v42 = vld [vmem:[#allocation7 + $0xc4] ss:$8 sps:$4 sm:$0xff]   ;;  %v1151_v43 = vld [vmem:[#allocation7 + $0xc0] ss:$8 sps:$4 sm:$0xff]  }
  0x69   :  { %217 = vmatprep.subr.bf16.mxu0 %v1101_v9  ;;  %468 = vmatprep.subr.bf16.mxu1 %v1122_v19  ;;  %v1152_v44 = vld [vmem:[#allocation7 + $0xd4] ss:$8 sps:$4 sm:$0xff]   ;;  %v1154_v45 = vld [vmem:[#allocation7 + $0xd0] ss:$8 sps:$4 sm:$0xff]   ;;  %v1155_v46 = vld [vmem:[#allocation7 + $0xe4] ss:$8 sps:$4 sm:$0xff]  }
  0x6a   :  { %v1157_v47 = vld [vmem:[#allocation7 + $0xe0] ss:$8 sps:$4 sm:$0xff]   ;;  %v1158_v48 = vld [vmem:[#allocation7 + $0xf4] ss:$8 sps:$4 sm:$0xff]   ;;  %v1160_v49 = vld [vmem:[#allocation7 + $0xf0] ss:$8 sps:$4 sm:$0xff]  }
  0x6b   :  { %v1161_v50 = vld [vmem:[#allocation8] ss:$8 sps:$4 sm:$0xff]   ;;  %v1163_v51 = vld [vmem:[#allocation8 + $0x4] ss:$8 sps:$4 sm:$0xff]   ;;  %v1166_v52 = vld [vmem:[#allocation8 + $0x14] ss:$8 sps:$4 sm:$0xff]  }
  0x6c   :  { %218 = vmatpush1.bf16.msra.mxu0 %v1103_v13  ;;  %469 = vmatpush1.bf16.msra.mxu1 %v1124_v22  ;;  %v1164_v53 = vld [vmem:[#allocation8 + $0x10] ss:$8 sps:$4 sm:$0xff]   ;;  %v1169_v54 = vld [vmem:[#allocation8 + $0x24] ss:$8 sps:$4 sm:$0xff]   ;;  %v1167_v55 = vld [vmem:[#allocation8 + $0x20] ss:$8 sps:$4 sm:$0xff]  }
  0x6d   :  { %219 = vmatprep.subr.bf16.mxu0 %v1104_v16  ;;  %470 = vmatprep.subr.bf16.mxu1 %v1125_v23  ;;  %v1172_v56 = vld [vmem:[#allocation8 + $0x34] ss:$8 sps:$4 sm:$0xff]   ;;  %v1170_v57 = vld [vmem:[#allocation8 + $0x30] ss:$8 sps:$4 sm:$0xff]   ;;  %v1175_v58 = vld [vmem:[#allocation8 + $0x44] ss:$8 sps:$4 sm:$0xff]  }
  0x6e   :  { %v1173_v59 = vld [vmem:[#allocation8 + $0x40] ss:$8 sps:$4 sm:$0xff]   ;;  %v1178_v60 = vld [vmem:[#allocation8 + $0x54] ss:$8 sps:$4 sm:$0xff]   ;;  %v1176_v61 = vld [vmem:[#allocation8 + $0x50] ss:$8 sps:$4 sm:$0xff]  }
  0x6f   :  { %v1181_v62 = vld [vmem:[#allocation8 + $0x64] ss:$8 sps:$4 sm:$0xff]   ;;  %v1179_v63 = vld [vmem:[#allocation8 + $0x60] ss:$8 sps:$4 sm:$0xff]   ;;  %v1184_v0 = vld [vmem:[#allocation8 + $0x74] ss:$8 sps:$4 sm:$0xff]  }
  0x70   :  { %220 = vmatpush1.bf16.msra.mxu0 %v1106_v17  ;;  %471 = vmatpush1.bf16.msra.mxu1 %v1127_v26  ;;  %v1182_v1 = vld [vmem:[#allocation8 + $0x70] ss:$8 sps:$4 sm:$0xff]   ;;  %v1187_v2 = vld [vmem:[#allocation8 + $0x84] ss:$8 sps:$4 sm:$0xff]   ;;  %v1185_v3 = vld [vmem:[#allocation8 + $0x80] ss:$8 sps:$4 sm:$0xff]  }
  0x71   :  { %221 = vmatprep.subr.bf16.mxu0 %v1107_v20  ;;  %472 = vmatprep.subr.bf16.mxu1 %v1128_v27  ;;  %v1190_v4 = vld [vmem:[#allocation8 + $0x94] ss:$8 sps:$4 sm:$0xff]   ;;  %v1188_v5 = vld [vmem:[#allocation8 + $0x90] ss:$8 sps:$4 sm:$0xff]   ;;  %v1193_v6 = vld [vmem:[#allocation8 + $0xa4] ss:$8 sps:$4 sm:$0xff]  }
  0x72   :  { %v1191_v7 = vld [vmem:[#allocation8 + $0xa0] ss:$8 sps:$4 sm:$0xff]   ;;  %v1196_v8 = vld [vmem:[#allocation8 + $0xb4] ss:$8 sps:$4 sm:$0xff]   ;;  %v1194_v9 = vld [vmem:[#allocation8 + $0xb0] ss:$8 sps:$4 sm:$0xff]  }
  0x73   :  { %v1199_v10 = vld [vmem:[#allocation8 + $0xc4] ss:$8 sps:$4 sm:$0xff]   ;;  %v1197_v11 = vld [vmem:[#allocation8 + $0xc0] ss:$8 sps:$4 sm:$0xff]   ;;  %v1202_v12 = vld [vmem:[#allocation8 + $0xd4] ss:$8 sps:$4 sm:$0xff]  }
  0x74   :  { %222 = vmatpush1.bf16.msra.mxu0 %v1109_v21  ;;  %473 = vmatpush1.bf16.msra.mxu1 %v1130_v29  ;;  %v1200_v13 = vld [vmem:[#allocation8 + $0xd0] ss:$8 sps:$4 sm:$0xff]   ;;  %v120_v15 = vshrl.u32 %v119_v14, 7  ;;  %v117_v17 = vld [vmem:[%s1544_s5] sm:$0x3]  ;;  %s948_s13 = sshll.u32 %s1375_s12, 4  ;;  %s949_s13 = int_to_ptr.vmem [resolvable:$true] %s948_s13 }
  0x75   :  { %223 = vmatprep.subr.bf16.mxu0 %v1110_v24  ;;  %474 = vmatprep.subr.bf16.mxu1 %v1131_v30  ;;  %s1335_s1 = scalar_lea.vmem %s949_s13, 128  ;;  %p1340_p13 = scmp.lt.s32.totalorder %s949_s13, %s949_s13 }
  0x76   :  { %v1495_v16 = vsub.s32 0, %v120_v15  ;;  %v1500_v18 = vsub.s32 1, %v120_v15  ;;  %p1336_p12 = scmp.ne.s32.totalorder %s949_s13, %s1335_s1  ;;  %p1341_p0 = scmp.lt.s32.totalorder %s1335_s1, %s1335_s1 }
  0x78   :  { %224 = vmatpush1.bf16.msra.mxu0 %v1112_v25  ;;  %475 = vmatpush1.bf16.msra.mxu1 %v1133_v31  ;;  %v122_v19 = vrot.slane %v117_v17, %v1495_v16  ;;  %v126_v20 = vrot.slane %v117_v17, %v1500_v18  ;;  %p1342_p1 = por %p1341_p0, %p1340_p13 }
  0x79   :  { %476 = vmatprep.subr.bf16.mxu1 %v1134_v32  ;;  %715 = vmatprep.subr.bf16.mxu0 %v1163_v51 }
  0x7a   :  { %p1343_p2 = pnand %p1342_p1, %p1336_p12 }
  0x7b   :  { %242 = vmatmul.mubr.bf16.vlgmr.msra.gmra.mrb[0].mxu0 %v100_v28 }
  0x7c   :  { %477 = vmatpush1.bf16.msra.mxu1 %v1136_v33  ;;  %716 = vmatpush1.bf16.msra.mxu0 %v1161_v50  ;;  %v1205_v33 = vld [vmem:[#allocation8 + $0xe4] ss:$8 sps:$4 sm:$0xff]  }
  0x7d   :  { %478 = vmatprep.subr.bf16.mxu1 %v1137_v34  ;;  %717 = vmatprep.subr.bf16.mxu0 %v1166_v52  ;;  %v1203_v34 = vld [vmem:[#allocation8 + $0xe0] ss:$8 sps:$4 sm:$0xff]  }
  0x80   :  { %479 = vmatpush1.bf16.msra.mxu1 %v1139_v35  ;;  %718 = vmatpush1.bf16.msra.mxu0 %v1164_v53  ;;  %v1208_v35 = vld [vmem:[#allocation8 + $0xf4] ss:$8 sps:$4 sm:$0xff]  }
  0x81   :  { %480 = vmatprep.subr.bf16.mxu1 %v1140_v36  ;;  %719 = vmatprep.subr.bf16.mxu0 %v1169_v54  ;;  %v1206_v36 = vld [vmem:[#allocation8 + $0xf0] ss:$8 sps:$4 sm:$0xff]  }
  0x84   :  { %481 = vmatpush1.bf16.msra.mxu1 %v1142_v37  ;;  %720 = vmatpush1.bf16.msra.mxu0 %v1167_v55  ;;  %v1209_v37 = vld [vmem:[#allocation10 + $0x40] sm:$0xff]  }
  0x85   :  { %482 = vmatprep.subr.bf16.mxu1 %v1143_v38  ;;  %721 = vmatprep.subr.bf16.mxu0 %v1172_v56  ;;  %v1210_v38 = vld [vmem:[#allocation10] sm:$0xff]  }
  0x88   :  { %483 = vmatpush1.bf16.msra.mxu1 %v1145_v39  ;;  %722 = vmatpush1.bf16.msra.mxu0 %v1170_v57  ;;  %v1211_v39 = vld [vmem:[#allocation10 + $0x48] sm:$0xff]  }
  0x89   :  { %484 = vmatprep.subr.bf16.mxu1 %v1146_v40  ;;  %723 = vmatprep.subr.bf16.mxu0 %v1175_v58  ;;  %v1212_v40 = vld [vmem:[#allocation10 + $0x8] sm:$0xff]  }
  0x8c   :  { %485 = vmatpush1.bf16.msra.mxu1 %v1148_v41  ;;  %724 = vmatpush1.bf16.msra.mxu0 %v1173_v59  ;;  %v1213_v41 = vld [vmem:[#allocation10 + $0x50] sm:$0xff]  }
  0x8d   :  { %486 = vmatprep.subr.bf16.mxu1 %v1149_v42  ;;  %725 = vmatprep.subr.bf16.mxu0 %v1178_v60  ;;  %v1214_v42 = vld [vmem:[#allocation10 + $0x10] sm:$0xff]  }
  0x90   :  { %487 = vmatpush1.bf16.msra.mxu1 %v1151_v43  ;;  %726 = vmatpush1.bf16.msra.mxu0 %v1176_v61  ;;  %v1215_v43 = vld [vmem:[#allocation10 + $0x58] sm:$0xff]  }
  0x91   :  { %488 = vmatprep.subr.bf16.mxu1 %v1152_v44  ;;  %727 = vmatprep.subr.bf16.mxu0 %v1181_v62  ;;  %v1216_v44 = vld [vmem:[#allocation10 + $0x18] sm:$0xff]   ;;  %v1219_v62 = vld [vmem:[#allocation10 + $0x68] sm:$0xff]  }
  0x94   :  { %489 = vmatpush1.bf16.msra.mxu1 %v1154_v45  ;;  %728 = vmatpush1.bf16.msra.mxu0 %v1179_v63  ;;  %v1217_v45 = vld [vmem:[#allocation10 + $0x60] sm:$0xff]   ;;  %v1220_v63 = vld [vmem:[#allocation10 + $0x28] sm:$0xff]  }
  0x95   :  { %490 = vmatprep.subr.bf16.mxu1 %v1155_v46  ;;  %729 = vmatprep.subr.bf16.mxu0 %v1184_v0  ;;  %v1218_v46 = vld [vmem:[#allocation10 + $0x20] sm:$0xff]   ;;  %v1221_v0 = vld [vmem:[#allocation10 + $0x70] sm:$0xff]  }
  0x98   :  { %491 = vmatpush1.bf16.msra.mxu1 %v1157_v47  ;;  %730 = vmatpush1.bf16.msra.mxu0 %v1182_v1  ;;  %v290_v47 = vld [vmem:[%s1545_s6] sm:$0x3]  ;;  %v1222_v1 = vld [vmem:[#allocation10 + $0x30] sm:$0xff]  }
  0x99   :  { %492 = vmatprep.subr.bf16.mxu1 %v1158_v48  ;;  %731 = vmatprep.subr.bf16.mxu0 %v1187_v2  ;;  %v295_v48 = vrot.slane %v290_v47, %v1495_v16  ;;  %v1223_v2 = vld [vmem:[#allocation10 + $0x78] sm:$0xff]  }
  0x9c   :  { %493 = vmatpush1.bf16.msra.mxu1 %v1160_v49  ;;  %732 = vmatpush1.bf16.msra.mxu0 %v1185_v3  ;;  %v299_v49 = vrot.slane %v290_v47, %v1500_v18  ;;  %v1224_v3 = vld [vmem:[#allocation10 + $0x38] sm:$0xff]  }
  0x9d   :  { %733 = vmatprep.subr.bf16.mxu0 %v1190_v4  ;;  %1056 = vmatprep.subr.bf16.mxu1 %v1209_v37  ;;  %v543_v4 = vld [vmem:[%s1546_s7] sm:$0x3] }
  0xa0   :  { %734 = vmatpush1.bf16.msra.mxu0 %v1188_v5  ;;  %v548_v5 = vrot.slane %v543_v4, %v1495_v16 }
  0xa1   :  { %735 = vmatprep.subr.bf16.mxu0 %v1193_v6  ;;  %v552_v6 = vrot.slane %v543_v4, %v1500_v18 }
  0xa4   :  { %736 = vmatpush1.bf16.msra.mxu0 %v1191_v7 }
  0xa5   :  { %737 = vmatprep.subr.bf16.mxu0 %v1196_v8 }
  0xa8   :  { %738 = vmatpush1.bf16.msra.mxu0 %v1194_v9 }
  0xa9   :  { %739 = vmatprep.subr.bf16.mxu0 %v1199_v10 }
  0xac   :  { %740 = vmatpush1.bf16.msra.mxu0 %v1197_v11 }
  0xad   :  { %741 = vmatprep.subr.bf16.mxu0 %v1202_v12 }
  0xb0   :  { %742 = vmatpush1.bf16.msra.mxu0 %v1200_v13 }
  0xb1   :  { %743 = vmatprep.subr.bf16.mxu0 %v1205_v33 }
  0xb4   :  { %744 = vmatpush1.bf16.msra.mxu0 %v1203_v34 }
  0xb5   :  { %745 = vmatprep.subr.bf16.mxu0 %v1208_v35 }
  0xb8   :  { %746 = vmatpush1.bf16.msra.mxu0 %v1206_v36 }
 0x14e   :  { %v243_v21 = vpop.f32.mrb[0].mxu0 }
 0x14f   :  { %v244_v22 = vadd.f32 %v243_v21, %v122_v19  ;;  %v245_v23 = vpop.f32.mrb[1].mxu0 }
 0x150   :  { %v246_v24 = vadd.f32 %v245_v23, %v126_v20  ;;  %v247_v25 = vpop.f32.mrb[2].mxu0 }
 0x151   :  { %vm250_vm0 = vcmp.gt.f32.partialorder %v244_v22, 0.0  ;;  %v252_v26 = vmul.f32 0.01, %v244_v22  ;;  %v248_v27 = vpop.f32.mrb[3].mxu0 }
 0x152   :  { %v253_v28 = vmul.f32 0.01, %v246_v24  ;;  %vm251_vm1 = vcmp.gt.f32.partialorder %v246_v24, 0.0 }
 0x153   :  { %v1504_v29 = vsel %vm250_vm0, %v244_v22, %v252_v26  ;;  %v1039_v22 = vld [vmem:[%s1547_s8] ss:$0 sm:$0xff] }
 0x154   :  { %v1506_v30 = vsel %vm251_vm1, %v246_v24, %v253_v28  ;;  %v256_v32 = vpack.c.bf16 %v1504_v29, %v1504_v29 }
 0x155   :  { %v257_v31 = vpack.c.bf16 %v1506_v30, %v1506_v30 }
 0x157   :  { %494 = vmatprep.mubr.bf16.mxu1 %v257_v31 }
 0x158   :  { %495 = vmatmul.mubr.bf16.vlgmr.msra.gmra.mrb[0].mxu1 %v256_v32 }
 0x159   :  { %1057 = vmatpush3.bf16.msra.mxu1 %v1210_v38 }
 0x15a   :  { %1058 = vmatprep.subr.bf16.mxu1 %v1211_v39 }
 0x15d   :  { %1059 = vmatpush3.bf16.msra.mxu1 %v1212_v40 }
 0x15e   :  { %1060 = vmatprep.subr.bf16.mxu1 %v1213_v41 }
 0x161   :  { %1061 = vmatpush3.bf16.msra.mxu1 %v1214_v42 }
 0x162   :  { %1062 = vmatprep.subr.bf16.mxu1 %v1215_v43 }
 0x165   :  { %1063 = vmatpush3.bf16.msra.mxu1 %v1216_v44 }
 0x166   :  { %1064 = vmatprep.subr.bf16.mxu1 %v1217_v45 }
 0x169   :  { %1065 = vmatpush3.bf16.msra.mxu1 %v1218_v46 }
 0x16a   :  { %1066 = vmatprep.subr.bf16.mxu1 %v1219_v62 }
 0x16d   :  { %1067 = vmatpush3.bf16.msra.mxu1 %v1220_v63 }
 0x16e   :  { %1068 = vmatprep.subr.bf16.mxu1 %v1221_v0 }
 0x171   :  { %1069 = vmatpush3.bf16.msra.mxu1 %v1222_v1 }
 0x172   :  { %1070 = vmatprep.subr.bf16.mxu1 %v1223_v2 }
 0x175   :  { %1071 = vmatpush3.bf16.msra.mxu1 %v1224_v3 }
 0x22b   :  { %v496_v50 = vpop.f32.mrb[0].mxu1 }
 0x22c   :  { %v497_v51 = vadd.f32 %v496_v50, %v295_v48  ;;  %v498_v52 = vpop.f32.mrb[1].mxu1 }
 0x22d   :  { %v499_v53 = vadd.f32 %v498_v52, %v299_v49  ;;  %v500_v54 = vpop.f32.mrb[2].mxu1 }
 0x22e   :  { %vm503_vm2 = vcmp.gt.f32.partialorder %v497_v51, 0.0  ;;  %v505_v55 = vmul.f32 0.01, %v497_v51  ;;  %v501_v56 = vpop.f32.mrb[3].mxu1 }
 0x22f   :  { %vm504_vm3 = vcmp.gt.f32.partialorder %v499_v53, 0.0  ;;  %v506_v57 = vmul.f32 0.01, %v499_v53 }
 0x230   :  { %v507_v58 = vsel %vm503_vm2, %v497_v51, %v505_v55 }
 0x231   :  { %v508_v59 = vsel %vm504_vm3, %v499_v53, %v506_v57  ;;  %v509_v61 = vpack.c.bf16 %v507_v58, %v507_v58 }
 0x232   :  { %v510_v60 = vpack.c.bf16 %v508_v59, %v508_v59 }
 0x234   :  { %747 = vmatprep.mubr.bf16.mxu0 %v510_v60 }
 0x235   :  { %748 = vmatmul.mubr.bf16.vlgmr.msra.gmra.mrb[4].mxu0 %v509_v61 }
 0x308   :  { %v749_v7 = vpop.f32.mrb[4].mxu0 }
 0x309   :  { %v750_v8 = vadd.f32 %v749_v7, %v548_v5  ;;  %v751_v9 = vpop.f32.mrb[5].mxu0 }
 0x30a   :  { %v752_v10 = vadd.f32 %v751_v9, %v552_v6  ;;  %v753_v11 = vpop.f32.mrb[6].mxu0 }
 0x30b   :  { %v756_v12 = vadd.f32 %v750_v8, %v1504_v29  ;;  %v754_v13 = vpop.f32.mrb[7].mxu0 }
 0x30c   :  { %v757_v14 = vadd.f32 %v752_v10, %v1506_v30 }
 0x30d   :  { %vm758_vm4 = vcmp.gt.f32.partialorder %v756_v12, 0.0  ;;  %v760_v15 = vmul.f32 0.01, %v756_v12 }
 0x30e   :  { %v761_v17 = vmul.f32 0.01, %v757_v14  ;;  %vm759_vm5 = vcmp.gt.f32.partialorder %v757_v14, 0.0 }
 0x30f   :  { %v762_v19 = vsel %vm758_vm4, %v756_v12, %v760_v15 }
 0x310   :  { %v763_v20 = vsel %vm759_vm5, %v757_v14, %v761_v17  ;;  %v764_v16 = vpack.c.bf16 %v762_v19, %v762_v19 }
 0x311   :  { %v765_v21 = vpack.c.bf16 %v763_v20, %v763_v20 }
 0x313   :  { %933 = vmatprep.mubr.bf16.mxu1 %v765_v21 }
 0x314   :  { %934 = vmatmul.mubr.bf16.vlgmr.msra.gmra.mrb[4].mxu1 %v764_v16 }
 0x3e7   :  { %v1072_v18 = vpop.f32.mrb[4].mxu1 }
 0x3e8   :  { %v1073_v23 = vpop.f32.mrb[5].mxu1 }
 0x3e9   :  { %v1074_v24 = vadd.f32 %v1073_v23, %v1072_v18  ;;  %v1075_v25 = vpop.f32.mrb[6].mxu1 }
 0x3ea   :  { %v1076_v26 = vpop.f32.mrb[7].mxu1 }
 0x3eb   :  { %v936_v27 = vadd.f32 %v1074_v24, %v1039_v22 }
 0x3ed   :  { %941 = vst [vmem:[#allocation11] sm:$0xff] %v936_v27 }
 0x3ee   :  { %1346 = shalt.err (!%p1343_p2)
}
 0x3ef   :  { %s1347_s8 = scalar_lea.hbm %s1548_s9, 128 }
 0x3f0   :  { %p1348_p3 = scmp.ne.s32.totalorder %s1548_s9, %s1347_s8  ;;  %p1351_p4 = scmp.lt.u32.totalorder %s1347_s8, %s1548_s9 }
 0x3f2   :  { %p1353_p5 = pnand %p1351_p4, %p1348_p3 }
 0x3f4   :  { %1356 = shalt.err (!%p1353_p5)
}
 0x3f5   :  { %951 = dma.vmem_to_hbm [thread:$0]  %s949_s13, 128, %s1548_s9, [#allocation4]  }
 0x3f6   :  { %1363 = dma.done.wait [#allocation4], 128  }
 0x3f7   :  { %1364 = vsyncadd [#allocation4], 4294967168 }
 0x3f8   :  { %955 = vsyncpa [#allocation3], 1 }
 0x3f9   :  { %956 = vsyncpa [#allocation6], 1 }
 0x3fa   :  { %957 = vsyncpa [#allocation9], 1 }
 0x3fb   :  { %958 = vsyncpa [#allocation4], 1 }

</bundles_post_ra>
